<compile_context>
chip_gen: v7x
topology: tpu7x:2x2x1
jax: 0.10.0
libtpu: 0.0.40
codegen_flags: <defaults>
</compile_context>

<pallas_src>
import jax
import jax.numpy as jnp
from jax import lax
from jax.experimental import pallas as pl
from jax.experimental.pallas import tpu as pltpu

# ----------------------------- model config ---------------------------------
BATCH = 2
SEQ = 8
HIDDEN = 32
N_HEADS = 4
HEAD_DIM = HIDDEN // N_HEADS
INTERMEDIATE = 64
VOCAB = 128
N_LAYERS = 2           # shard covers layers [0, N_LAYERS-1]; is_last_layer=True
RMS_EPS = 1e-6
ROPE_BASE = 10000.0
BS = BATCH * SEQ

TEMP = 0.8
TOP_K = 20
TOP_P = 0.75


# ----------------------------- Pallas kernel ---------------------------------
def _shard_kernel(x0_ref, hmask_ref, bias_ref, cos_ref, sin_ref,
                  inln_ref, postln_ref, wqkvr_ref, wo_ref, wgu_ref, wd_ref,
                  finln_ref, wlm_ref,
                  kv_ref, logits_ref, x_scr):
    """One grid step == one decoder layer.  x is resident in VMEM scratch.
    Last step additionally runs final RMSNorm + lm_head."""
    l = pl.program_id(0)

    @pl.when(l == 0)
    def _():
        x_scr[...] = x0_ref[...]            # load embeddings into the carry

    x = x_scr[...]                          # (BS, H)

    # ---- input RMSNorm ----
    var = jnp.mean(x * x, axis=-1, keepdims=True)
    r = x * lax.rsqrt(var + RMS_EPS) * inln_ref[0]

    # ---- fused [Q | K | V | Q@Prot | K@Prot] projection ----
    # rotate_half is pre-folded into the weights, so RoPE below is two FMAs.
    qkvr = jnp.dot(r, wqkvr_ref[0], preferred_element_type=jnp.float32)  # (BS, 5H)
    q = qkvr[:, 0 * HIDDEN:1 * HIDDEN]
    k = qkvr[:, 1 * HIDDEN:2 * HIDDEN]
    v = qkvr[:, 2 * HIDDEN:3 * HIDDEN]
    q_rot = qkvr[:, 3 * HIDDEN:4 * HIDDEN]
    k_rot = qkvr[:, 4 * HIDDEN:5 * HIDDEN]

    cos = cos_ref[...]                      # (BS, H), per-head tiled
    sin = sin_ref[...]
    q = q * cos + q_rot * sin
    k = k * cos + k_rot * sin

    # KV cache write: RoPE'd K and raw V packed lane-contiguously [K | V].
    kv_ref[0] = jnp.concatenate([k, v], axis=-1)              # (BS, 2H)

    # ---- batched-head attention (all heads + both batches, 2 matmuls) ----
    hmask = hmask_ref[...]                                    # (nH*BS, H) 0/1
    q_big = jnp.concatenate([q] * N_HEADS, axis=0) * hmask    # (nH*BS, H)
    s = lax.dot_general(q_big, k, (((1,), (1,)), ((), ())),
                        preferred_element_type=jnp.float32)   # (nH*BS, BS)
    s = s * (1.0 / (HEAD_DIM ** 0.5)) + bias_ref[...]         # causal+batch bias
    m = jnp.max(s, axis=-1, keepdims=True)
    p = jnp.exp(s - m)
    p = p / jnp.sum(p, axis=-1, keepdims=True)                # exact f32 divide
    a_big = jnp.dot(p, v, preferred_element_type=jnp.float32) * hmask  # (nH*BS, H)
    attn = a_big[0 * BS:1 * BS]
    for h in range(1, N_HEADS):                               # static, aligned slices
        attn = attn + a_big[h * BS:(h + 1) * BS]              # (BS, H)

    # ---- output projection + residual ----
    x = x + jnp.dot(attn, wo_ref[0], preferred_element_type=jnp.float32)

    # ---- post-attention RMSNorm ----
    var2 = jnp.mean(x * x, axis=-1, keepdims=True)
    r2 = x * lax.rsqrt(var2 + RMS_EPS) * postln_ref[0]

    # ---- fused gate|up SwiGLU MLP + residual ----
    gu = jnp.dot(r2, wgu_ref[0], preferred_element_type=jnp.float32)   # (BS, 2I)
    g = gu[:, :INTERMEDIATE]
    u = gu[:, INTERMEDIATE:]
    mlp = jnp.dot((g * jax.nn.sigmoid(g)) * u, wd_ref[0],
                  preferred_element_type=jnp.float32)
    x = x + mlp
    x_scr[...] = x                          # carry to next layer

    # ---- is_last_layer(): final RMSNorm + lm_head, fused on last step ----
    @pl.when(l == pl.num_programs(0) - 1)
    def _():
        var3 = jnp.mean(x * x, axis=-1, keepdims=True)
        r3 = x * lax.rsqrt(var3 + RMS_EPS) * finln_ref[...]
        logits_ref[...] = jnp.dot(r3, wlm_ref[...],
                                  preferred_element_type=jnp.float32)   # (BS, V)


def pallas_shard_forward(params, x0, hmask, bias, cos_full, sin_full):
    """Whole shard (all layers + lm_head) in a single pallas_call."""
    grid_spec = pltpu.PrefetchScalarGridSpec(
        num_scalar_prefetch=0,
        grid=(N_LAYERS,),
        in_specs=[
            pl.BlockSpec((BS, HIDDEN), lambda l: (0, 0)),                  # x0
            pl.BlockSpec((N_HEADS * BS, HIDDEN), lambda l: (0, 0)),        # head mask
            pl.BlockSpec((N_HEADS * BS, BS), lambda l: (0, 0)),            # attn bias
            pl.BlockSpec((BS, HIDDEN), lambda l: (0, 0)),                  # cos
            pl.BlockSpec((BS, HIDDEN), lambda l: (0, 0)),                  # sin
            pl.BlockSpec((1, 1, HIDDEN), lambda l: (l, 0, 0)),             # input_ln
            pl.BlockSpec((1, 1, HIDDEN), lambda l: (l, 0, 0)),             # post_ln
            pl.BlockSpec((1, HIDDEN, 5 * HIDDEN), lambda l: (l, 0, 0)),    # wqkv+rot
            pl.BlockSpec((1, HIDDEN, HIDDEN), lambda l: (l, 0, 0)),        # wo
            pl.BlockSpec((1, HIDDEN, 2 * INTERMEDIATE), lambda l: (l, 0, 0)),  # wgu
            pl.BlockSpec((1, INTERMEDIATE, HIDDEN), lambda l: (l, 0, 0)),  # wd
            pl.BlockSpec((1, HIDDEN), lambda l: (0, 0)),                   # final ln
            pl.BlockSpec((HIDDEN, VOCAB), lambda l: (0, 0)),               # lm head
        ],
        out_specs=(pl.BlockSpec((1, BS, 2 * HIDDEN), lambda l: (l, 0, 0)),  # kv
                   pl.BlockSpec((BS, VOCAB), lambda l: (0, 0))),            # logits
        scratch_shapes=[pltpu.VMEM((BS, HIDDEN), jnp.float32)],
    )
    return pl.pallas_call(
        _shard_kernel,
        out_shape=(jax.ShapeDtypeStruct((N_LAYERS, BS, 2 * HIDDEN), jnp.float32),
                   jax.ShapeDtypeStruct((BS, VOCAB), jnp.float32)),
        grid_spec=grid_spec,
        compiler_params=pltpu.CompilerParams(
            dimension_semantics=("arbitrary",)),
    )(x0, hmask, bias, cos_full, sin_full,
      params["input_ln"], params["post_ln"], params["wqkvr"], params["wo"],
      params["wgu"], params["wd"], params["final_ln"], params["lm_head"])


# ------------------------------- JAX glue ------------------------------------
def rope_cos_sin(seq_len, dim):
    inv_freq = 1.0 / (ROPE_BASE ** (jnp.arange(0, dim, 2, dtype=jnp.float32) / dim))
    pos = jnp.arange(seq_len, dtype=jnp.float32)       # cache_position = arange(S)
    freqs = jnp.outer(pos, inv_freq)                   # (S, D/2)
    emb = jnp.concatenate([freqs, freqs], axis=-1)     # (S, D)
    return jnp.cos(emb), jnp.sin(emb)


def rotate_half_matrix():
    """(H, H) block-diagonal +/-1 matrix P with x @ P == rotate_half(x) per head."""
    half = HEAD_DIM // 2
    idx = jnp.arange(half)
    p_head = jnp.zeros((HEAD_DIM, HEAD_DIM), jnp.float32)
    p_head = p_head.at[idx + half, idx].set(-1.0)      # out[j]   = -x[j+half], j<half
    p_head = p_head.at[idx, idx + half].set(1.0)       # out[j+h] =  x[j]
    return jnp.kron(jnp.eye(N_HEADS, dtype=jnp.float32), p_head)


def sample_logits(logits, temp, top_p, top_k, key):
    """Temperature + top-k + top-p filtering, then categorical sample."""
    logits = logits / temp
    # top-k
    top_vals = lax.top_k(logits, top_k)[0]
    kth = top_vals[..., -1:]
    logits = jnp.where(logits < kth, -jnp.inf, logits)
    # top-p (nucleus)
    probs = jax.nn.softmax(logits, axis=-1)
    sorted_probs = jnp.sort(probs, axis=-1)[..., ::-1]
    cum = jnp.cumsum(sorted_probs, axis=-1)
    keep_sorted = (cum - sorted_probs) <= top_p        # always keeps at least 1
    keep_counts = jnp.sum(keep_sorted, axis=-1, keepdims=True)
    thresh = jnp.take_along_axis(sorted_probs, keep_counts - 1, axis=-1)
    logits = jnp.where(probs < thresh, -jnp.inf, logits)
    return jax.random.categorical(key, logits, axis=-1)


def init_params(key):
    def normal(k, shape):
        return jax.random.normal(k, shape, dtype=jnp.float32) * 0.02

    keys = jax.random.split(key, 2 + N_LAYERS)
    p_rot = rotate_half_matrix()                       # (H, H)
    in_ln, post_ln, wqkvr, wo, wgu, wd = [], [], [], [], [], []
    for li in range(N_LAYERS):
        lk = jax.random.split(keys[2 + li], 7)
        wq = normal(lk[0], (HIDDEN, HIDDEN))
        wk = normal(lk[1], (HIDDEN, HIDDEN))
        wv = normal(lk[2], (HIDDEN, HIDDEN))
        wg = normal(lk[4], (HIDDEN, INTERMEDIATE))
        wu = normal(lk[5], (HIDDEN, INTERMEDIATE))
        in_ln.append(jnp.ones((1, HIDDEN), jnp.float32))
        post_ln.append(jnp.ones((1, HIDDEN), jnp.float32))
        # Fused [Wq | Wk | Wv | Wq@P | Wk@P] so the kernel's QKV matmul also
        # emits the rotate_half'd columns (RoPE permutation on the MXU).
        wqkvr.append(jnp.concatenate([wq, wk, wv, wq @ p_rot, wk @ p_rot], axis=1))
        wo.append(normal(lk[3], (HIDDEN, HIDDEN)))
        wgu.append(jnp.concatenate([wg, wu], axis=1))  # (H, 2I) fused gate|up
        wd.append(normal(lk[6], (INTERMEDIATE, HIDDEN)))
    return {
        "embed": normal(keys[0], (VOCAB, HIDDEN)),
        "lm_head": normal(keys[1], (HIDDEN, VOCAB)),
        "final_ln": jnp.ones((1, HIDDEN), jnp.float32),
        "input_ln": jnp.stack(in_ln),                  # (L, 1, H)
        "post_ln": jnp.stack(post_ln),                 # (L, 1, H)
        "wqkvr": jnp.stack(wqkvr),                     # (L, H, 5H)
        "wo": jnp.stack(wo),                           # (L, H, H)
        "wgu": jnp.stack(wgu),                         # (L, H, 2I)
        "wd": jnp.stack(wd),                           # (L, I, H)
    }


def sharded_hf_forward(params, input_ids, sample_key):
    """Mirrors ShardedHuggingFaceModel.forward for a shard covering all layers
    (is_first_layer and is_last_layer both true, past_kvs=None / prefill)."""
    B, S = input_ids.shape
    # embed_tokens
    x0 = params["embed"][input_ids].reshape(B * S, HIDDEN)       # (B*S, H) f32

    # rotary_emb(position_ids = arange(0..S)), tiled per batch-row and per head
    cos, sin = rope_cos_sin(S, HEAD_DIM)                         # (S, D)
    cos_full = jnp.tile(jnp.tile(cos, (B, 1)), (1, N_HEADS))     # (B*S, H)
    sin_full = jnp.tile(jnp.tile(sin, (B, 1)), (1, N_HEADS))

    # Head-selection mask for the batched-head attention formulation.
    hmask = jnp.kron(jnp.eye(N_HEADS, dtype=jnp.float32),
                     jnp.ones((B * S, HEAD_DIM), jnp.float32))   # (nH*BS, H)

    # Precomputed causal + same-batch additive bias, tiled over heads (rows).
    rows = jnp.arange(B * S)
    b_r, s_r = rows // S, rows % S
    allowed = (b_r[:, None] == b_r[None, :]) & (s_r[None, :] <= s_r[:, None])
    bias = jnp.tile(jnp.where(allowed, 0.0, -1e30).astype(jnp.float32),
                    (N_HEADS, 1))                                # (nH*BS, BS)

    # TODO(synk): past_kvs / DynamicCache continuation (decode with cached KV)
    # is not implemented; this covers the prefill (past_seen_tokens == 0) path.
    kv, logits_all = pallas_shard_forward(params, x0, hmask, bias,
                                          cos_full, sin_full)

    # is_last_layer(): sample the last-token logits.
    last_logits = logits_all.reshape(B, S, VOCAB)[:, -1, :]      # (B, V)
    output_token = sample_logits(last_logits, TEMP, TOP_P, TOP_K,
                                 sample_key).reshape(-1)

    # One reshape/transpose of the stacked KV into HF cache layout (per layer:
    # (B, nH, S, D)) — no per-layer transposes on the critical path.
    k_all = kv[:, :, :HIDDEN].reshape(N_LAYERS, B, S, N_HEADS, HEAD_DIM)
    v_all = kv[:, :, HIDDEN:].reshape(N_LAYERS, B, S, N_HEADS, HEAD_DIM)
    k_all = k_all.transpose(0, 1, 3, 2, 4)
    v_all = v_all.transpose(0, 1, 3, 2, 4)
    next_kvs = [(k_all[li], v_all[li]) for li in range(N_LAYERS)]
    return output_token, next_kvs


# --------------------------------- main ---------------------------------------
if __name__ == "__main__":
    root = jax.random.PRNGKey(0)
    k_params, k_inputs, k_sample = jax.random.split(root, 3)

    params = init_params(k_params)
    input_ids = jax.random.randint(k_inputs, (BATCH, SEQ), 0, VOCAB, dtype=jnp.int32)

    output_token, next_kvs = sharded_hf_forward(params, input_ids, k_sample)
    output_token = jax.block_until_ready(output_token)
    for (k, v) in next_kvs:
        jax.block_until_ready(k)
        jax.block_until_ready(v)

    assert output_token.shape == (BATCH,)
    assert len(next_kvs) == N_LAYERS
    assert next_kvs[0][0].shape == (BATCH, N_HEADS, SEQ, HEAD_DIM)
    print("KERNEL_OK")
</pallas_src>

<mosaic_0001>
module attributes {stable_mosaic.version = 11 : i64} {
  func.func @_shard_kernel(%arg0: i32, %arg1: memref<16x32xf32, #tpu.memory_space<vmem>>, %arg2: memref<64x32xf32, #tpu.memory_space<vmem>>, %arg3: memref<64x16xf32, #tpu.memory_space<vmem>>, %arg4: memref<16x32xf32, #tpu.memory_space<vmem>>, %arg5: memref<16x32xf32, #tpu.memory_space<vmem>>, %arg6: memref<1x1x32xf32, #tpu.memory_space<vmem>>, %arg7: memref<1x1x32xf32, #tpu.memory_space<vmem>>, %arg8: memref<1x32x160xf32, #tpu.memory_space<vmem>>, %arg9: memref<1x32x32xf32, #tpu.memory_space<vmem>>, %arg10: memref<1x32x128xf32, #tpu.memory_space<vmem>>, %arg11: memref<1x64x32xf32, #tpu.memory_space<vmem>>, %arg12: memref<1x32xf32, #tpu.memory_space<vmem>>, %arg13: memref<32x128xf32, #tpu.memory_space<vmem>>, %arg14: memref<1x16x64xf32, #tpu.memory_space<vmem>>, %arg15: memref<16x128xf32, #tpu.memory_space<vmem>>, %arg16: memref<16x32xf32, #tpu.memory_space<vmem>>) attributes {dimension_semantics = [#tpu.dimension_semantics<arbitrary>], iteration_bounds = array<i64: 2>, scalar_prefetch = 0 : i64, scratch_operands = 1 : i64, tpu.core_type = #tpu.core_type<tc>, window_params = [{pipeline_mode = #tpu.pipeline_mode<synchronous>, transform_indices = @transform_0, window_bounds = array<i64: 16, 32>}, {pipeline_mode = #tpu.pipeline_mode<synchronous>, transform_indices = @transform_1, window_bounds = array<i64: 64, 32>}, {pipeline_mode = #tpu.pipeline_mode<synchronous>, transform_indices = @transform_2, window_bounds = array<i64: 64, 16>}, {pipeline_mode = #tpu.pipeline_mode<synchronous>, transform_indices = @transform_3, window_bounds = array<i64: 16, 32>}, {pipeline_mode = #tpu.pipeline_mode<synchronous>, transform_indices = @transform_4, window_bounds = array<i64: 16, 32>}, {transform_indices = @transform_5, window_bounds = array<i64: 1, 1, 32>}, {transform_indices = @transform_6, window_bounds = array<i64: 1, 1, 32>}, {transform_indices = @transform_7, window_bounds = array<i64: 1, 32, 160>}, {transform_indices = @transform_8, window_bounds = array<i64: 1, 32, 32>}, {transform_indices = @transform_9, window_bounds = array<i64: 1, 32, 128>}, {transform_indices = @transform_10, window_bounds = array<i64: 1, 64, 32>}, {pipeline_mode = #tpu.pipeline_mode<synchronous>, transform_indices = @transform_11, window_bounds = array<i64: 1, 32>}, {pipeline_mode = #tpu.pipeline_mode<synchronous>, transform_indices = @transform_12, window_bounds = array<i64: 32, 128>}, {transform_indices = @transform_13, window_bounds = array<i64: 1, 16, 64>}, {pipeline_mode = #tpu.pipeline_mode<synchronous>, transform_indices = @transform_14, window_bounds = array<i64: 16, 128>}]} {
    %c0_i32 = arith.constant 0 : i32
    %0 = arith.cmpi eq, %arg0, %c0_i32 : i32
    %1 = arith.extui %0 : i1 to i32
    %c0_i32_0 = arith.constant 0 : i32
    %2 = arith.cmpi ne, %1, %c0_i32_0 : i32
    scf.if %2 {
      %c0_49 = arith.constant 0 : index
      %c0_50 = arith.constant 0 : index
      %102 = vector.load %arg1[%c0_49, %c0_50] : memref<16x32xf32, #tpu.memory_space<vmem>>, vector<16x32xf32>
      %c0_51 = arith.constant 0 : index
      %c0_52 = arith.constant 0 : index
      %103 = vector.load %arg16[%c0_51, %c0_52] : memref<16x32xf32, #tpu.memory_space<vmem>>, vector<16x32xf32>
      tpu.vector_store %arg16[%c0_51, %c0_52], %102 {strides = array<i32>} : memref<16x32xf32, #tpu.memory_space<vmem>>, vector<16x32xf32>,
    } else {
    }
    %c0 = arith.constant 0 : index
    %c0_1 = arith.constant 0 : index
    %3 = vector.load %arg16[%c0, %c0_1] : memref<16x32xf32, #tpu.memory_space<vmem>>, vector<16x32xf32>
    %4 = arith.mulf %3, %3 : vector<16x32xf32>
    %cst = arith.constant dense<0.000000e+00> : vector<16xf32>
    %5 = vector.multi_reduction <add>, %4, %cst [1] : vector<16x32xf32> to vector<16xf32>
    %6 = vector.shape_cast %5 : vector<16xf32> to vector<16x1xf32>
    %cst_2 = arith.constant 3.200000e+01 : f32
    %7 = vector.broadcast %cst_2 : f32 to vector<16x1xf32>
    %8 = arith.divf %6, %7 : vector<16x1xf32>
    %cst_3 = arith.constant 9.99999997E-7 : f32
    %9 = vector.broadcast %cst_3 : f32 to vector<16x1xf32>
    %10 = arith.addf %8, %9 : vector<16x1xf32>
    %11 = math.rsqrt %10 : vector<16x1xf32>
    %12 = vector.broadcast %11 : vector<16x1xf32> to vector<16x32xf32>
    %13 = arith.mulf %3, %12 : vector<16x32xf32>
    %c0_4 = arith.constant 0 : index
    %c0_5 = arith.constant 0 : index
    %c0_6 = arith.constant 0 : index
    %14 = vector.load %arg6[%c0_4, %c0_5, %c0_6] : memref<1x1x32xf32, #tpu.memory_space<vmem>>, vector<1x1x32xf32>
    %15 = vector.shape_cast %14 : vector<1x1x32xf32> to vector<1x32xf32>
    %16 = vector.broadcast %15 : vector<1x32xf32> to vector<16x32xf32>
    %17 = arith.mulf %13, %16 : vector<16x32xf32>
    %c0_7 = arith.constant 0 : index
    %c0_8 = arith.constant 0 : index
    %c0_9 = arith.constant 0 : index
    %18 = vector.load %arg8[%c0_7, %c0_8, %c0_9] : memref<1x32x160xf32, #tpu.memory_space<vmem>>, vector<1x32x160xf32>
    %19 = vector.shape_cast %18 : vector<1x32x160xf32> to vector<32x160xf32>
    %cst_10 = arith.constant dense<0.000000e+00> : vector<16x160xf32>
    %20 = tpu.matmul %17, %19, %cst_10 {dimension_numbers = #tpu.dot_dimension_numbers<[1], [0], [0], [1], [0, 0, 1, 1], [], []>} : vector<16x32xf32>, vector<32x160xf32>, vector<16x160xf32> -> vector<16x160xf32>
    %21 = vector.extract_strided_slice %20 {offsets = [0, 0], sizes = [16, 32], strides = [1, 1]} : vector<16x160xf32> to vector<16x32xf32>
    %22 = vector.extract_strided_slice %20 {offsets = [0, 32], sizes = [16, 32], strides = [1, 1]} : vector<16x160xf32> to vector<16x32xf32>
    %23 = vector.extract_strided_slice %20 {offsets = [0, 64], sizes = [16, 32], strides = [1, 1]} : vector<16x160xf32> to vector<16x32xf32>
    %24 = vector.extract_strided_slice %20 {offsets = [0, 96], sizes = [16, 32], strides = [1, 1]} : vector<16x160xf32> to vector<16x32xf32>
    %25 = vector.extract_strided_slice %20 {offsets = [0, 128], sizes = [16, 32], strides = [1, 1]} : vector<16x160xf32> to vector<16x32xf32>
    %c0_11 = arith.constant 0 : index
    %c0_12 = arith.constant 0 : index
    %26 = vector.load %arg4[%c0_11, %c0_12] : memref<16x32xf32, #tpu.memory_space<vmem>>, vector<16x32xf32>
    %c0_13 = arith.constant 0 : index
    %c0_14 = arith.constant 0 : index
    %27 = vector.load %arg5[%c0_13, %c0_14] : memref<16x32xf32, #tpu.memory_space<vmem>>, vector<16x32xf32>
    %28 = arith.mulf %21, %26 : vector<16x32xf32>
    %29 = arith.mulf %24, %27 : vector<16x32xf32>
    %30 = arith.addf %28, %29 : vector<16x32xf32>
    %31 = arith.mulf %22, %26 : vector<16x32xf32>
    %32 = arith.mulf %25, %27 : vector<16x32xf32>
    %33 = arith.addf %31, %32 : vector<16x32xf32>
    %34 = tpu.concatenate %33, %23 in 1 : vector<16x32xf32>, vector<16x32xf32> -> vector<16x64xf32>
    %c0_15 = arith.constant 0 : index
    %c0_16 = arith.constant 0 : index
    %c0_17 = arith.constant 0 : index
    %35 = vector.load %arg14[%c0_15, %c0_16, %c0_17] : memref<1x16x64xf32, #tpu.memory_space<vmem>>, vector<1x16x64xf32>
    %36 = vector.shape_cast %35 : vector<1x16x64xf32> to vector<16x64xf32>
    %37 = vector.shape_cast %34 : vector<16x64xf32> to vector<1x16x64xf32>
    tpu.vector_store %arg14[%c0_15, %c0_16, %c0_17], %37 {strides = array<i32>} : memref<1x16x64xf32, #tpu.memory_space<vmem>>, vector<1x16x64xf32>,
    %c0_18 = arith.constant 0 : index
    %c0_19 = arith.constant 0 : index
    %38 = vector.load %arg2[%c0_18, %c0_19] : memref<64x32xf32, #tpu.memory_space<vmem>>, vector<64x32xf32>
    %39 = tpu.concatenate %30, %30, %30, %30 in 0 : vector<16x32xf32>, vector<16x32xf32>, vector<16x32xf32>, vector<16x32xf32> -> vector<64x32xf32>
    %40 = arith.mulf %39, %38 : vector<64x32xf32>
    %cst_20 = arith.constant dense<0.000000e+00> : vector<64x16xf32>
    %41 = tpu.matmul %40, %33, %cst_20 {dimension_numbers = #tpu.dot_dimension_numbers<[1], [1], [0], [0], [0, 0, 1, 0], [], []>} : vector<64x32xf32>, vector<16x32xf32>, vector<64x16xf32> -> vector<64x16xf32>
    %cst_21 = arith.constant 0.353553385 : f32
    %42 = vector.broadcast %cst_21 : f32 to vector<64x16xf32>
    %43 = arith.mulf %41, %42 : vector<64x16xf32>
    %c0_22 = arith.constant 0 : index
    %c0_23 = arith.constant 0 : index
    %44 = vector.load %arg3[%c0_22, %c0_23] : memref<64x16xf32, #tpu.memory_space<vmem>>, vector<64x16xf32>
    %45 = arith.addf %43, %44 : vector<64x16xf32>
    %cst_24 = arith.constant dense<0xFF800000> : vector<64xf32>
    %46 = vector.multi_reduction <maximumf>, %45, %cst_24 [1] : vector<64x16xf32> to vector<64xf32>
    %47 = vector.shape_cast %46 : vector<64xf32> to vector<64x1xf32>
    %48 = vector.broadcast %47 : vector<64x1xf32> to vector<64x16xf32>
    %49 = arith.subf %45, %48 : vector<64x16xf32>
    %50 = math.exp %49 : vector<64x16xf32>
    %cst_25 = arith.constant dense<0.000000e+00> : vector<64xf32>
    %51 = vector.multi_reduction <add>, %50, %cst_25 [1] : vector<64x16xf32> to vector<64xf32>
    %52 = vector.shape_cast %51 : vector<64xf32> to vector<64x1xf32>
    %53 = vector.broadcast %52 : vector<64x1xf32> to vector<64x16xf32>
    %54 = arith.divf %50, %53 : vector<64x16xf32>
    %cst_26 = arith.constant dense<0.000000e+00> : vector<64x32xf32>
    %55 = tpu.matmul %54, %23, %cst_26 {dimension_numbers = #tpu.dot_dimension_numbers<[1], [0], [0], [1], [0, 0, 1, 1], [], []>} : vector<64x16xf32>, vector<16x32xf32>, vector<64x32xf32> -> vector<64x32xf32>
    %56 = arith.mulf %55, %38 : vector<64x32xf32>
    %57 = vector.extract_strided_slice %56 {offsets = [0, 0], sizes = [16, 32], strides = [1, 1]} : vector<64x32xf32> to vector<16x32xf32>
    %58 = vector.extract_strided_slice %56 {offsets = [16, 0], sizes = [16, 32], strides = [1, 1]} : vector<64x32xf32> to vector<16x32xf32>
    %59 = arith.addf %57, %58 : vector<16x32xf32>
    %60 = vector.extract_strided_slice %56 {offsets = [32, 0], sizes = [16, 32], strides = [1, 1]} : vector<64x32xf32> to vector<16x32xf32>
    %61 = arith.addf %59, %60 : vector<16x32xf32>
    %62 = vector.extract_strided_slice %56 {offsets = [48, 0], sizes = [16, 32], strides = [1, 1]} : vector<64x32xf32> to vector<16x32xf32>
    %63 = arith.addf %61, %62 : vector<16x32xf32>
    %c0_27 = arith.constant 0 : index
    %c0_28 = arith.constant 0 : index
    %c0_29 = arith.constant 0 : index
    %64 = vector.load %arg9[%c0_27, %c0_28, %c0_29] : memref<1x32x32xf32, #tpu.memory_space<vmem>>, vector<1x32x32xf32>
    %65 = vector.shape_cast %64 : vector<1x32x32xf32> to vector<32x32xf32>
    %cst_30 = arith.constant dense<0.000000e+00> : vector<16x32xf32>
    %66 = tpu.matmul %63, %65, %cst_30 {dimension_numbers = #tpu.dot_dimension_numbers<[1], [0], [0], [1], [0, 0, 1, 1], [], []>} : vector<16x32xf32>, vector<32x32xf32>, vector<16x32xf32> -> vector<16x32xf32>
    %67 = arith.addf %3, %66 : vector<16x32xf32>
    %68 = arith.mulf %67, %67 : vector<16x32xf32>
    %cst_31 = arith.constant dense<0.000000e+00> : vector<16xf32>
    %69 = vector.multi_reduction <add>, %68, %cst_31 [1] : vector<16x32xf32> to vector<16xf32>
    %70 = vector.shape_cast %69 : vector<16xf32> to vector<16x1xf32>
    %cst_32 = arith.constant 3.200000e+01 : f32
    %71 = vector.broadcast %cst_32 : f32 to vector<16x1xf32>
    %72 = arith.divf %70, %71 : vector<16x1xf32>
    %cst_33 = arith.constant 9.99999997E-7 : f32
    %73 = vector.broadcast %cst_33 : f32 to vector<16x1xf32>
    %74 = arith.addf %72, %73 : vector<16x1xf32>
    %75 = math.rsqrt %74 : vector<16x1xf32>
    %76 = vector.broadcast %75 : vector<16x1xf32> to vector<16x32xf32>
    %77 = arith.mulf %67, %76 : vector<16x32xf32>
    %c0_34 = arith.constant 0 : index
    %c0_35 = arith.constant 0 : index
    %c0_36 = arith.constant 0 : index
    %78 = vector.load %arg7[%c0_34, %c0_35, %c0_36] : memref<1x1x32xf32, #tpu.memory_space<vmem>>, vector<1x1x32xf32>
    %79 = vector.shape_cast %78 : vector<1x1x32xf32> to vector<1x32xf32>
    %80 = vector.broadcast %79 : vector<1x32xf32> to vector<16x32xf32>
    %81 = arith.mulf %77, %80 : vector<16x32xf32>
    %c0_37 = arith.constant 0 : index
    %c0_38 = arith.constant 0 : index
    %c0_39 = arith.constant 0 : index
    %82 = vector.load %arg10[%c0_37, %c0_38, %c0_39] : memref<1x32x128xf32, #tpu.memory_space<vmem>>, vector<1x32x128xf32>
    %83 = vector.shape_cast %82 : vector<1x32x128xf32> to vector<32x128xf32>
    %cst_40 = arith.constant dense<0.000000e+00> : vector<16x128xf32>
    %84 = tpu.matmul %81, %83, %cst_40 {dimension_numbers = #tpu.dot_dimension_numbers<[1], [0], [0], [1], [0, 0, 1, 1], [], []>} : vector<16x32xf32>, vector<32x128xf32>, vector<16x128xf32> -> vector<16x128xf32>
    %85 = vector.extract_strided_slice %84 {offsets = [0, 0], sizes = [16, 64], strides = [1, 1]} : vector<16x128xf32> to vector<16x64xf32>
    %86 = vector.extract_strided_slice %84 {offsets = [0, 64], sizes = [16, 64], strides = [1, 1]} : vector<16x128xf32> to vector<16x64xf32>
    %87 = arith.negf %85 : vector<16x64xf32>
    %88 = math.exp %87 : vector<16x64xf32>
    %cst_41 = arith.constant 1.000000e+00 : f32
    %89 = vector.broadcast %cst_41 : f32 to vector<16x64xf32>
    %90 = arith.addf %89, %88 : vector<16x64xf32>
    %91 = arith.divf %89, %90 : vector<16x64xf32>
    %92 = arith.mulf %85, %91 : vector<16x64xf32>
    %93 = arith.mulf %92, %86 : vector<16x64xf32>
    %c0_42 = arith.constant 0 : index
    %c0_43 = arith.constant 0 : index
    %c0_44 = arith.constant 0 : index
    %94 = vector.load %arg11[%c0_42, %c0_43, %c0_44] : memref<1x64x32xf32, #tpu.memory_space<vmem>>, vector<1x64x32xf32>
    %95 = vector.shape_cast %94 : vector<1x64x32xf32> to vector<64x32xf32>
    %cst_45 = arith.constant dense<0.000000e+00> : vector<16x32xf32>
    %96 = tpu.matmul %93, %95, %cst_45 {dimension_numbers = #tpu.dot_dimension_numbers<[1], [0], [0], [1], [0, 0, 1, 1], [], []>} : vector<16x64xf32>, vector<64x32xf32>, vector<16x32xf32> -> vector<16x32xf32>
    %97 = arith.addf %67, %96 : vector<16x32xf32>
    %c0_46 = arith.constant 0 : index
    %c0_47 = arith.constant 0 : index
    %98 = vector.load %arg16[%c0_46, %c0_47] : memref<16x32xf32, #tpu.memory_space<vmem>>, vector<16x32xf32>
    tpu.vector_store %arg16[%c0_46, %c0_47], %97 {strides = array<i32>} : memref<16x32xf32, #tpu.memory_space<vmem>>, vector<16x32xf32>,
    %c1_i32 = arith.constant 1 : i32
    %99 = arith.cmpi eq, %arg0, %c1_i32 : i32
    %100 = arith.extui %99 : i1 to i32
    %c0_i32_48 = arith.constant 0 : i32
    %101 = arith.cmpi ne, %100, %c0_i32_48 : i32
    scf.if %101 {
      %102 = arith.mulf %97, %97 : vector<16x32xf32>
      %cst_49 = arith.constant dense<0.000000e+00> : vector<16xf32>
      %103 = vector.multi_reduction <add>, %102, %cst_49 [1] : vector<16x32xf32> to vector<16xf32>
      %104 = vector.shape_cast %103 : vector<16xf32> to vector<16x1xf32>
      %cst_50 = arith.constant 3.200000e+01 : f32
      %105 = vector.broadcast %cst_50 : f32 to vector<16x1xf32>
      %106 = arith.divf %104, %105 : vector<16x1xf32>
      %cst_51 = arith.constant 9.99999997E-7 : f32
      %107 = vector.broadcast %cst_51 : f32 to vector<16x1xf32>
      %108 = arith.addf %106, %107 : vector<16x1xf32>
      %109 = math.rsqrt %108 : vector<16x1xf32>
      %110 = vector.broadcast %109 : vector<16x1xf32> to vector<16x32xf32>
      %111 = arith.mulf %97, %110 : vector<16x32xf32>
      %c0_52 = arith.constant 0 : index
      %c0_53 = arith.constant 0 : index
      %112 = vector.load %arg12[%c0_52, %c0_53] : memref<1x32xf32, #tpu.memory_space<vmem>>, vector<1x32xf32>
      %113 = vector.broadcast %112 : vector<1x32xf32> to vector<16x32xf32>
      %114 = arith.mulf %111, %113 : vector<16x32xf32>
      %c0_54 = arith.constant 0 : index
      %c0_55 = arith.constant 0 : index
      %115 = vector.load %arg13[%c0_54, %c0_55] : memref<32x128xf32, #tpu.memory_space<vmem>>, vector<32x128xf32>
      %cst_56 = arith.constant dense<0.000000e+00> : vector<16x128xf32>
      %116 = tpu.matmul %114, %115, %cst_56 {dimension_numbers = #tpu.dot_dimension_numbers<[1], [0], [0], [1], [0, 0, 1, 1], [], []>} : vector<16x32xf32>, vector<32x128xf32>, vector<16x128xf32> -> vector<16x128xf32>
      %c0_57 = arith.constant 0 : index
      %c0_58 = arith.constant 0 : index
      %117 = vector.load %arg15[%c0_57, %c0_58] : memref<16x128xf32, #tpu.memory_space<vmem>>, vector<16x128xf32>
      tpu.vector_store %arg15[%c0_57, %c0_58], %116 {strides = array<i32>} : memref<16x128xf32, #tpu.memory_space<vmem>>, vector<16x128xf32>,
    } else {
    }
    return
  }
  func.func @transform_0(%arg0: i32) -> (i32, i32) {
    %c0_i32 = arith.constant 0 : i32
    %c0_i32_0 = arith.constant 0 : i32
    %c0_i32_1 = arith.constant 0 : i32
    return %c0_i32, %c0_i32_0 : i32, i32
  }
  func.func @transform_1(%arg0: i32) -> (i32, i32) {
    %c0_i32 = arith.constant 0 : i32
    %c0_i32_0 = arith.constant 0 : i32
    %c0_i32_1 = arith.constant 0 : i32
    return %c0_i32, %c0_i32_0 : i32, i32
  }
  func.func @transform_2(%arg0: i32) -> (i32, i32) {
    %c0_i32 = arith.constant 0 : i32
    %c0_i32_0 = arith.constant 0 : i32
    %c0_i32_1 = arith.constant 0 : i32
    return %c0_i32, %c0_i32_0 : i32, i32
  }
  func.func @transform_3(%arg0: i32) -> (i32, i32) {
    %c0_i32 = arith.constant 0 : i32
    %c0_i32_0 = arith.constant 0 : i32
    %c0_i32_1 = arith.constant 0 : i32
    return %c0_i32, %c0_i32_0 : i32, i32
  }
  func.func @transform_4(%arg0: i32) -> (i32, i32) {
    %c0_i32 = arith.constant 0 : i32
    %c0_i32_0 = arith.constant 0 : i32
    %c0_i32_1 = arith.constant 0 : i32
    return %c0_i32, %c0_i32_0 : i32, i32
  }
  func.func @transform_5(%arg0: i32) -> (i32, i32, i32) {
    %c0_i32 = arith.constant 0 : i32
    %c0_i32_0 = arith.constant 0 : i32
    %c0_i32_1 = arith.constant 0 : i32
    return %arg0, %c0_i32, %c0_i32_0 : i32, i32, i32
  }
  func.func @transform_6(%arg0: i32) -> (i32, i32, i32) {
    %c0_i32 = arith.constant 0 : i32
    %c0_i32_0 = arith.constant 0 : i32
    %c0_i32_1 = arith.constant 0 : i32
    return %arg0, %c0_i32, %c0_i32_0 : i32, i32, i32
  }
  func.func @transform_7(%arg0: i32) -> (i32, i32, i32) {
    %c0_i32 = arith.constant 0 : i32
    %c0_i32_0 = arith.constant 0 : i32
    %c0_i32_1 = arith.constant 0 : i32
    return %arg0, %c0_i32, %c0_i32_0 : i32, i32, i32
  }
  func.func @transform_8(%arg0: i32) -> (i32, i32, i32) {
    %c0_i32 = arith.constant 0 : i32
    %c0_i32_0 = arith.constant 0 : i32
    %c0_i32_1 = arith.constant 0 : i32
    return %arg0, %c0_i32, %c0_i32_0 : i32, i32, i32
  }
  func.func @transform_9(%arg0: i32) -> (i32, i32, i32) {
    %c0_i32 = arith.constant 0 : i32
    %c0_i32_0 = arith.constant 0 : i32
    %c0_i32_1 = arith.constant 0 : i32
    return %arg0, %c0_i32, %c0_i32_0 : i32, i32, i32
  }
  func.func @transform_10(%arg0: i32) -> (i32, i32, i32) {
    %c0_i32 = arith.constant 0 : i32
    %c0_i32_0 = arith.constant 0 : i32
    %c0_i32_1 = arith.constant 0 : i32
    return %arg0, %c0_i32, %c0_i32_0 : i32, i32, i32
  }
  func.func @transform_11(%arg0: i32) -> (i32, i32) {
    %c0_i32 = arith.constant 0 : i32
    %c0_i32_0 = arith.constant 0 : i32
    %c0_i32_1 = arith.constant 0 : i32
    return %c0_i32, %c0_i32_0 : i32, i32
  }
  func.func @transform_12(%arg0: i32) -> (i32, i32) {
    %c0_i32 = arith.constant 0 : i32
    %c0_i32_0 = arith.constant 0 : i32
    %c0_i32_1 = arith.constant 0 : i32
    return %c0_i32, %c0_i32_0 : i32, i32
  }
  func.func @transform_13(%arg0: i32) -> (i32, i32, i32) {
    %c0_i32 = arith.constant 0 : i32
    %c0_i32_0 = arith.constant 0 : i32
    %c0_i32_1 = arith.constant 0 : i32
    return %arg0, %c0_i32, %c0_i32_0 : i32, i32, i32
  }
  func.func @transform_14(%arg0: i32) -> (i32, i32) {
    %c0_i32 = arith.constant 0 : i32
    %c0_i32_0 = arith.constant 0 : i32
    %c0_i32_1 = arith.constant 0 : i32
    return %c0_i32, %c0_i32_0 : i32, i32
  }
}

</mosaic_0001>

<bundles_post_ra>
// kernel: tpu_custom_call.1
= control target key start
LH: loop header
LB: loop body
LE: loop exit
PB: predicated region body
PF: predicated region fallthrough
CT: control target
= control target key end

     0   :  { %s3022_s0 = inlined_call_operand.hbm [shape: f32[16,32], index: 0, kind: input, shape index: {}]   ;;  %s3023_s1 = inlined_call_operand.vmem [shape: f32[64,32], index: 1, kind: input, shape index: {}]   ;;  %s3024_s2 = inlined_call_operand.vmem [shape: f32[64,16], index: 2, kind: input, shape index: {}]   ;;  %s3025_s3 = inlined_call_operand.hbm [shape: f32[16,32], index: 3, kind: input, shape index: {}]   ;;  %s3026_s4 = inlined_call_operand.hbm [shape: f32[16,32], index: 4, kind: input, shape index: {}]   ;;  %s3027_s5 = inlined_call_operand.vmem [shape: f32[2,1,32], index: 5, kind: input, shape index: {}]   ;;  %s3028_s6 = inlined_call_operand.vmem [shape: f32[2,1,32], index: 6, kind: input, shape index: {}]   ;;  %s3029_s7 = inlined_call_operand.vmem [shape: f32[2,32,160], index: 7, kind: input, shape index: {}]   ;;  %s3030_s8 = inlined_call_operand.vmem [shape: f32[2,32,32], index: 8, kind: input, shape index: {}]   ;;  %s3031_s9 = inlined_call_operand.vmem [shape: f32[2,32,128], index: 9, kind: input, shape index: {}]   ;;  %s3032_s10 = inlined_call_operand.vmem [shape: f32[2,64,32], index: 10, kind: input, shape index: {}]   ;;  %s3033_s11 = inlined_call_operand.vmem [shape: f32[1,32], index: 11, kind: input, shape index: {}]   ;;  %s3034_s12 = inlined_call_operand.vmem [shape: f32[32,128], index: 12, kind: input, shape index: {}]   ;;  %s3035_s13 = inlined_call_operand.hbm [shape: f32[2,16,64], index: 13, kind: output, shape index: {0}]   ;;  %s3036_s14 = inlined_call_operand.hbm [shape: f32[16,128], index: 14, kind: output, shape index: {1}]  }
   0x1   :  { %3052 = sst [smem:[#allocation23_spill]] %s3033_s11 }
   0x2   :  { %3053 = sst [smem:[#allocation24_spill]] %s3035_s13 }
   0x3   :  { %3054 = sst [smem:[#allocation25_spill]] %s3036_s14 }
   0x4   :  { %20 = vsyncpa [#allocation4], 0 }
   0x5   :  { %21 = vsyncpa [#allocation7], 0 }
   0x6   :  { %22 = vsyncpa [#allocation5], 0 }
   0x7   :  { %24 = vsyncpa [#allocation5 + $0x1], 0 }
   0x8   :  { %25 = vsyncpa [#allocation11], 0  ;;  %s2495_s29 = smov 0   ;;  %s2497_s30 = smov 0  }
   0x9   :  { %s2499_s15 = smov 0   ;;  %s2501_s16 = smov 0  }
   0xa LB: > { %3055 = sst [smem:[#allocation16_spill]] %s2393_s29  ;;  %s2516_s17 = sadd.s32 4294967295, %s2405_s16   ;;  %s2405_s16 = sphi %s2501_s16, %s3090_s16   ;;  %s2401_s15 = sphi %s2499_s15, %s3092_s15   ;;  %s2397_s30 = sphi %s2497_s30, %s3094_s30   ;;  %s2393_s29 = sphi %s2495_s29, %s3093_s29  }
   0xb   : > { %3056 = sst [smem:[#allocation17_spill]] %s2401_s15  ;;  %s1821_s18 = sadd.s32 4294967294, %s2405_s16  }
   0xc   : > { %3057 = sst [smem:[#allocation18_spill]] %s2405_s16  ;;  %s2520_s19 = sadd.s32 1, %s2405_s16  }
   0xd   : > { %3058 = sst [smem:[#allocation19_spill]] %s2520_s19  ;;  %s341_s20 = sadd.s32 1, %s2401_s15 }
   0xe   : > { %s338_s21 = ssub.s32 %s2405_s16, %s2520_s19  ;;  %p351_p0 = scmp.ne.s32.totalorder %s2401_s15, %s2397_s30 }
   0xf   : > { %p339_p1 = scmp.eq.s32.totalorder %s338_s21, 0  ;;  %p3043_p2 = scmp.eq.s32.totalorder %s2516_s17, 1 }
  0x10   : > { %p357_p3 = scmp.ne.s32.totalorder %s2397_s30, %s2393_s29  ;;  %p358_p4 = scmp.eq.s32.totalorder %s1821_s18, 1 }
  0x11   : > { %s2531_s22 = scalar_select %p339_p1, %s2401_s15, %s341_s20  }
  0x12   : > { %p2535_p5 = por %p3043_p2, %p351_p0  ;;  %p2539_p6 = por %p358_p4, %p357_p3 }
  0x13   : > { %3059 = sst [smem:[#allocation20_spill]] %s2531_s22  ;;  %p1822_p7 = scmp.ge.s32.totalorder %s2405_s16, 1 }
  0x14   : > { %s3060_s23 = scalar_select %p2535_p5, 1, 0 }
  0x15   : > { %s3062_s24 = scalar_select %p2539_p6, 1, 0 }
  0x16   : > { %3061 = sst [smem:[#allocation21_spill]] %s3060_s23  ;;  %p386_p8 = scmp.lt.s32.totalorder %s2405_s16, 3 }
  0x17   : > { %3063 = sst [smem:[#allocation22_spill]] %s3062_s24  ;;  %p3044_p10 = scmp.eq.s32.totalorder %s2516_s17, 0 }
  0x18   : > { %p2547_p11 = pnand %p1822_p7, %p386_p8  ;;  %s2407_s26 = smov [#allocation6]  }
  0x19   : > { %s417_s27 = sshll.u32 %s2407_s26, 4  ;;  %s2408_s18 = smov [#allocation3]   ;;  %s2553_s27 = int_to_ptr.vmem [resolvable:$true] %s417_s27 }
  0x1a   : > { %s3064_s25 = scalar_select %p2547_p11, 1, 0 }
  0x1b   : > { %p2097_p12 = pneg %p2547_p11  ;;  %s398_s20 = sshll.u32 %s2408_s18, 4  ;;  %s2561_s20 = int_to_ptr.vmem [resolvable:$true] %s398_s20 }
  0x1c   : > { %s2409_s21 = smov [#allocation8]   ;;  %s2221_s24 = scalar_lea.hbm %s3025_s3, 256 }
  0x1d   : > { %p2557_p13 = pnand %p3044_p10, %p2097_p12  ;;  %s2563_s22 = sshll.u32 %s2409_s21, 4  ;;  %s431_s22 = int_to_ptr.vmem [resolvable:$true] %s2563_s22 }
  0x1e   : > { %p2222_p0 = scmp.ne.s32.totalorder %s3025_s3, %s2221_s24  ;;  %p2228_p7 = scmp.lt.u32.totalorder %s2221_s24, %s3025_s3 }
  0x1f   : > { %p2573_p1 = pneg %p2557_p13 }
  0x21   : > { %p2224_p3 = pnand %p2573_p1, %p2222_p0 }
  0x23   : > { %p2225_p4 = pneg %p2224_p3 }
  0x25   : > { %p2230_p8 = pnand %p2228_p7, %p2225_p4 }
  0x27   : > { %2233 = shalt.err (!%p2230_p8)
}
  0x28   : > { %s2234_s29 = scalar_lea.vmem %s2553_s27, 256  ;;  %p2242_p10 = scmp.lt.s32.totalorder %s2553_s27, %s2553_s27 }
  0x29   : > { %p2235_p12 = scmp.ne.s32.totalorder %s2553_s27, %s2234_s29  ;;  %p2243_p6 = scmp.lt.s32.totalorder %s2234_s29, %s2234_s29 }
  0x2b   : > { %p2237_p2 = pnand %p2235_p12, %p2573_p1  ;;  %p2244_p0 = por %p2243_p6, %p2242_p10 }
  0x2d   : > { %p2238_p9 = pneg %p2237_p2 }
  0x2f   : > { %p2245_p3 = pnand %p2244_p0, %p2238_p9 }
  0x31   : > { %2248 = shalt.err (!%p2245_p3)
}
  0x32   : > { %s2410_s15 = smov 128   ;;  %s2411_s19 = smov 8  }
  0x33   : > { %2103 = dma.hbm_to_vmem [thread:$0]  (!%p2557_p13), %s3025_s3, 256, %s2553_s27, [#allocation7], %s2410_s15, %s2410_s15, %s2411_s19  }
  0x34   : > { %s2249_s29 = scalar_lea.hbm %s3022_s0, 256 }
  0x35   : > { %p2250_p2 = scmp.ne.s32.totalorder %s3022_s0, %s2249_s29  ;;  %p2256_p10 = scmp.lt.u32.totalorder %s2249_s29, %s3022_s0 }
  0x37   : > { %p2252_p6 = pnand %p2250_p2, %p2573_p1 }
  0x39   : > { %p2253_p9 = pneg %p2252_p6 }
  0x3b   : > { %p2258_p4 = pnand %p2256_p10, %p2253_p9 }
  0x3d   : > { %2261 = shalt.err (!%p2258_p4)
}
  0x3e   : > { %s2262_s27 = scalar_lea.vmem %s2561_s20, 256  ;;  %p2270_p0 = scmp.lt.s32.totalorder %s2561_s20, %s2561_s20 }
  0x3f   : > { %p2263_p7 = scmp.ne.s32.totalorder %s2561_s20, %s2262_s27  ;;  %p2271_p3 = scmp.lt.s32.totalorder %s2262_s27, %s2262_s27 }
  0x41   : > { %p2265_p8 = pnand %p2263_p7, %p2573_p1  ;;  %p2272_p2 = por %p2271_p3, %p2270_p0 }
  0x43   : > { %p2266_p12 = pneg %p2265_p8 }
  0x45   : > { %p2273_p6 = pnand %p2272_p2, %p2266_p12 }
  0x47   : > { %2276 = shalt.err (!%p2273_p6)
}
  0x48   : > { %2100 = dma.hbm_to_vmem [thread:$0]  (!%p2557_p13), %s3022_s0, 256, %s2561_s20, [#allocation4], %s2410_s15, %s2410_s15, %s2411_s19  }
  0x49   : > { %s2277_s24 = scalar_lea.hbm %s3026_s4, 256 }
  0x4a   : > { %p2278_p9 = scmp.ne.s32.totalorder %s3026_s4, %s2277_s24  ;;  %p2284_p7 = scmp.lt.u32.totalorder %s2277_s24, %s3026_s4 }
  0x4c   : > { %p2280_p10 = pnand %p2278_p9, %p2573_p1 }
  0x4e   : > { %p2281_p4 = pneg %p2280_p10 }
  0x50   : > { %p2286_p8 = pnand %p2284_p7, %p2281_p4 }
  0x52   : > { %2289 = shalt.err (!%p2286_p8)
}
  0x53   : > { %s2290_s27 = scalar_lea.vmem %s431_s22, 256  ;;  %p2298_p2 = scmp.lt.s32.totalorder %s431_s22, %s431_s22 }
  0x54   : > { %p2291_p12 = scmp.ne.s32.totalorder %s431_s22, %s2290_s27  ;;  %p2299_p6 = scmp.lt.s32.totalorder %s2290_s27, %s2290_s27 }
  0x56   : > { %p2293_p0 = pnand %p2291_p12, %p2573_p1  ;;  %p2300_p5 = por %p2299_p6, %p2298_p2 }
  0x58   : > { %p2294_p3 = pneg %p2293_p0 }
  0x5a   : > { %p2301_p11 = pnand %p2300_p5, %p2294_p3 }
  0x5c   : > { %2304 = shalt.err (!%p2301_p11)
}
  0x5d   : > { %2106 = dma.hbm_to_vmem [thread:$0]  (!%p2557_p13), %s3026_s4, 256, %s431_s22, [#allocation7], %s2410_s15, %s2410_s15, %s2411_s19  }
  0x5e   : > { %p3067_p9 = scmp.ne.s32.totalorder %s3064_s25, 0 }
  0x5f   : > { %p3068_p1 = scmp.eq.s32.totalorder (!%p3067_p9), %s2516_s17, 0 }
  0x60   : > { %496 = sbr.rel (%p3067_p9) target bundleno = 2892 (0xb4c), region = 72 }
  0x67   : > { %2376 = dma.done.wait (%p3068_p1), [#allocation4], 256   ;;  %p3069_p10 = pmov %p3068_p1 }
  0x68   : > { %p3070_p5 = pmov %p3068_p1 }
  0x69   : > { %2378 = vsyncadd (%p3069_p10), [#allocation4], 4294967040 }
  0x6a   : > { %2380 = dma.done.wait (%p3070_p5), [#allocation7], 512   ;;  %p3071_p11 = pmov %p3068_p1 }
  0x6b   : > { %s3051_s16 = sand.u32 1, %s2397_s30   ;;  %p571_p13 = scmp.lt.s32.totalorder %s2516_s17, 1 }
  0x6c   : > { %2382 = vsyncadd (%p3071_p11), [#allocation7], 4294966784  ;;  %s1831_s22 = sshll.u32 %s3051_s16, 4  ;;  %p3072_p4 = scmp.ne.s32.totalorder %s2516_s17, 0 }
  0x6d   : > { %s2660_s25 = scalar_select %p571_p13, %s2516_s17, 1 }
  0x6e   : > { %s2692_s23 = scalar_lea.vmem [#allocation9], %s1831_s22  ;;  %600 = sbr.rel (%p3072_p4) target bundleno = 117 (0x75), region = 88  ;;  %v601_v0 = vld [vmem:[#allocation3] sm:$0xff] (!%p3072_p4)  ;;  %vm603_vm0 = vcmask (!%p3072_p4), 261120   ;;  %v602_v1 = vld [vmem:[#allocation3 + $0x8] sm:$0xff] (!%p3072_p4) }
  0x6f   : > { %s1882_s24 = sshll.u32 %s2660_s25, 6  ;;  %s1883_s26 = sshll.u32 %s2660_s25, 5  ;;  %604 = vst.msk [vmem:[#allocation2] sm:$0xff] (!%p3072_p4), %vm603_vm0, %v601_v0  ;;  %605 = vst.msk [vmem:[#allocation2 + $0x8] sm:$0xff] (!%p3072_p4), %vm603_vm0, %v602_v1 }
  0x70   : > { %s2675_s29 = scalar_lea.vmem %s3029_s7, %s1882_s24  ;;  %s2680_s11 = scalar_lea.vmem %s3030_s8, %s1883_s26 }
  0x71   : > { %s2685_s16 = scalar_lea.vmem %s3031_s9, %s1883_s26  ;;  %s2690_s14 = scalar_lea.vmem %s3032_s10, %s1882_s24 }
  0x75 PF: > { %vm610_vm1 = vcmask 261120   ;;  %v636_v8 = vld [vmem:[%s2675_s29 + $0x8] sm:$0xff]  ;;  %v638_v9 = vld [vmem:[%s2675_s29 + $0x18] sm:$0xff]  ;;  %v635_v10 = vld [vmem:[%s2675_s29] sm:$0xff]  ;;  %v2412_v15 = vmov 0.0   ;;  %s2413_s22 = smov 32   ;;  %s3073_s26 = scalar_lea.vmem %s3027_s5, %s2660_s25 }
  0x76   : > { %v2696_v2 = vld [vmem:[#allocation2] sm:$0xff]  ;;  %v2698_v3 = vld [vmem:[#allocation2 + $0x8] sm:$0xff]  ;;  %v2019_v11 = vpack.c.bf16 %v638_v9, %v636_v8  ;;  %v637_v12 = vld [vmem:[%s2675_s29 + $0x10] sm:$0xff]  ;;  %713 = vmatprep.mubr.f32.mxu0 %v2412_v15  ;;  %s2414_s18 = smov 96   ;;  %vm968_vm3 = vcmask 130048   ;;  %s3074_s21 = scalar_lea.vmem %s3028_s6, %s2660_s25  ;;  %vm792_vm4 = vcmask 523264  }
  0x77   : > { %v608_v4 = vmul.f32 %v2696_v2, %v2696_v2  ;;  %v609_v5 = vmul.f32 %v2698_v3, %v2698_v3  ;;  %v640_v13 = vld [vmem:[%s2675_s29 + $0x28] sm:$0xff]  ;;  %v642_v14 = vld [vmem:[%s2675_s29 + $0x38] sm:$0xff]  ;;  %v2021_v16 = vpack.c.bf16 %v637_v12, %v635_v10  ;;  %v639_v18 = vld [vmem:[%s2675_s29 + $0x20] sm:$0xff]  ;;  %p1871_p7 = scmp.ne.s32.totalorder %s2516_s17, 1 }
  0x78   : > { %v2023_v17 = vpack.c.bf16 %v642_v14, %v640_v13  ;;  %v641_v19 = vld [vmem:[%s2675_s29 + $0x30] sm:$0xff]  ;;  %2020 = vmatprep.subr.bf16.mxu0 %v2019_v11  ;;  %v726_v21 = vld [vmem:[#allocation6] sm:$0xff]  ;;  %v2715_v22 = vld [vmem:[#allocation6 + $0x8] sm:$0xff]  ;;  %s3075_s19 = sld [smem:[#allocation23_spill]] (!%p1871_p7) }
  0x79   : > { %v611_v6 = vsel %vm610_vm1, %v608_v4, 0.0  ;;  %v614_v7 = vsel %vm610_vm1, %v609_v5, 0.0  ;;  %2022 = vmatpush1.bf16.msra.mxu0 %v2021_v16  ;;  %v2025_v20 = vpack.c.bf16 %v641_v19, %v639_v18  ;;  %754 = vrot.lane.b32.xlu1 %v726_v21, %s2413_s22  ;;  %v1841_v30 = vld [vmem:[%s3073_s26] ss:$0 sm:$0xff]  ;;  %v728_v36 = vld [vmem:[#allocation8] sm:$0xff]  ;;  %v729_v40 = vld [vmem:[#allocation8 + $0x8] sm:$0xff] }
  0x7a   : > { %612 = vadd.xlane.f32.xlu0 %v611_v6  ;;  %2024 = vmatprep.subr.bf16.mxu0 %v2023_v17  ;;  %vm2028_vm2 = vmpackc.low %vm610_vm1, %vm610_vm1  ;;  %v2758_v62 = vld [vmem:[%s3023_s1] sm:$0xff]  ;;  %v2763_v63 = vld [vmem:[%s3023_s1 + $0x10] sm:$0xff]  ;;  %s2415_s26 = smov 64  }
  0x7b   : > { %v2772_v6 = vld [vmem:[%s3023_s1 + $0x8] sm:$0xff]  ;;  %v2777_v8 = vld [vmem:[%s3023_s1 + $0x18] sm:$0xff]  ;;  %v2784_v10 = vld [vmem:[%s3023_s1 + $0x20] sm:$0xff] }
  0x7c   : > { %v2792_v14 = vld [vmem:[%s3023_s1 + $0x28] sm:$0xff]  ;;  %v2807_v18 = vld [vmem:[%s3023_s1 + $0x38] sm:$0xff] }
  0x7d   : > { %2026 = vmatpush1.bf16.msra.mxu0 %v2025_v20  ;;  %756 = vrot.lane.b32.xlu1 %v2715_v22, %s2413_s22 }
  0x7e   : > { %615 = vadd.xlane.f32.xlu0 %v614_v7 }
  0xeb   : > { %v755_v45 = vpop.permute.xlu1 %754 }
  0xef   : > { %v757_v47 = vpop.permute.xlu1 %756 }
 0x107   : > { %v613_v23 = vpop.xlane.xlu0 %612 }
 0x108   : > { %v618_v24 = vmul.f32 0.03125, %v613_v23  ;;  %v952_v23 = vld [vmem:[%s3024_s2] sm:$0xff] }
 0x10a   : > { %v620_v25 = vadd.f32 1e-06, %v618_v24 }
 0x10b   : > { %v616_v26 = vpop.xlane.xlu0 %615 }
 0x10c   : > { %2169 = vrsqrt.f32 %v620_v25  ;;  %v619_v27 = vmul.f32 0.03125, %v616_v26 }
 0x10e   : > { %v621_v28 = vadd.f32 1e-06, %v619_v27  ;;  %v954_v27 = vld [vmem:[%s3024_s2 + $0x10] sm:$0xff] }
 0x110   : > { %2171 = vrsqrt.f32 %v621_v28 }
 0x116   : > { %v2170_v29 = vpop.eup %2169 }
 0x117   : > { %v624_v31 = vmul.f32 %v2170_v29, %v2696_v2 }
 0x119   : > { %v633_v32 = vmul.f32 %v1841_v30, %v624_v31 }
 0x11a   : > { %v2172_v33 = vpop.eup %2171 }
 0x11b   : > { %1842 = vmatmul.mubr.msk.f32.vlgmr.msra.gmra.mrb[0].mxu0 %vm610_vm1, %v633_v32  ;;  %v625_v34 = vmul.f32 %v2172_v33, %v2698_v3  ;;  %v955_v32 = vld [vmem:[%s3024_s2 + $0x18] sm:$0xff] }
 0x11c   : > { %719 = vmatprep.mubr.f32.mxu0 %v2412_v15  ;;  %v2799_v15 = vld [vmem:[%s3023_s1 + $0x30] sm:$0xff] }
 0x11d   : > { %v634_v35 = vmul.f32 %v1841_v30, %v625_v34 }
 0x11f   : > { %1843 = vmatmul.mubr.msk.f32.gmra.mrb[2].mxu0 %vm610_vm1, %v634_v35 }
 0x1ee   : > { %v2728_v37 = vpop.f32.mrb[0].mxu0 }
 0x1ef   : > { %v717_v38 = vpop.f32.mrb[1].mxu0  ;;  %v760_v46 = vmul.f32 %v755_v45, %v2728_v37  ;;  %v730_v60 = vmul.f32 %v726_v21, %v2728_v37  ;;  %v956_v45 = vld [vmem:[%s3024_s2 + $0x20] sm:$0xff] }
 0x1f0   : > { %v762_v39 = vmul.f32 %v728_v36, %v717_v38 }
 0x1f2   : > { %766 = vrot.lane.b32.xlu0 %v762_v39, %s2413_s22  ;;  %v2731_v41 = vpop.f32.mrb[2].mxu0 }
 0x1f3   : > { %v723_v42 = vpop.f32.mrb[3].mxu0  ;;  %v2164_v43 = vpack.i.bf16 %v2731_v41, %v2728_v37  ;;  %v761_v50 = vmul.f32 %v757_v47, %v2731_v41  ;;  %v731_v1 = vmul.f32 %v2715_v22, %v2731_v41  ;;  %v953_v22 = vld [vmem:[%s3024_s2 + $0x8] sm:$0xff] }
 0x1f4   : > { %v763_v44 = vmul.f32 %v729_v40, %v723_v42 }
 0x1f6   : > { %768 = vrot.lane.b32.xlu1 %v763_v44, %s2413_s22 }
 0x1fa   : > { %734 = vrot.lane.b32.xlu1 %v728_v36, %s2414_s18 }
 0x1fe   : > { %736 = vrot.lane.b32.xlu1 %v729_v40, %s2414_s18 }
 0x264   : > { %v767_v48 = vpop.permute.xlu0 %766 }
 0x265   : > { %v772_v49 = vadd.f32 %v767_v48, %v760_v46  ;;  %v957_v46 = vld [vmem:[%s3024_s2 + $0x28] sm:$0xff] }
 0x267   : > { %776 = vrot.lane.b32.xlu1 %v772_v49, %s2414_s18 }
 0x268   : > { %v769_v51 = vpop.permute.xlu1 %768 }
 0x269   : > { %v773_v52 = vadd.f32 %v769_v51, %v761_v50 }
 0x26b   : > { %778 = vrot.lane.b32.xlu1 %v773_v52, %s2414_s18 }
 0x26c   : > { %v735_v53 = vpop.permute.xlu1 %734 }
 0x26d   : > { %v740_v54 = vmul.f32 %v735_v53, %v2728_v37 }
 0x26f   : > { %744 = vrot.lane.b32.xlu1 %v740_v54, %s2413_s22 }
 0x270   : > { %v737_v55 = vpop.permute.xlu1 %736 }
 0x271   : > { %v741_v56 = vmul.f32 %v737_v55, %v2731_v41  ;;  %v958_v55 = vld [vmem:[%s3024_s2 + $0x30] sm:$0xff] }
 0x273   : > { %746 = vrot.lane.b32.xlu0 %v741_v56, %s2413_s22  ;;  %v959_v56 = vld [vmem:[%s3024_s2 + $0x38] sm:$0xff] }
 0x2d9   : > { %v2746_v57 = vpop.permute.xlu1 %776 }
 0x2dd   : > { %v2748_v58 = vpop.permute.xlu1 %778 }
 0x2de   : > { %v2027_v59 = vpack.c.bf16 %v2748_v58, %v2746_v57 }
 0x2e0   : > { %2029 = vmatprep.subr.msk.bf16.mxu0 %vm2028_vm2, %v2027_v59  ;;  %2077 = vmatprep.subr.msk.bf16.mxu1 %vm2028_vm2, %v2027_v59 }
 0x2e1   : > { %2032 = vmatpush3.bf16.xpose.msk.msra.mxu0 %vm2028_vm2, %v2027_v59  ;;  %2078 = vmatpush3.bf16.xpose.msk.msra.mxu1 %vm2028_vm2, %v2027_v59  ;;  %v745_v61 = vpop.permute.xlu1 %744 }
 0x2e2   : > { %v750_v0 = vadd.f32 %v745_v61, %v730_v60 }
 0x2e4   : > { %v803_v4 = vmul.f32 %v2758_v62, %v750_v0  ;;  %v805_v5 = vmul.f32 %v2763_v63, %v750_v0  ;;  %v807_v13 = vmul.f32 %v2784_v10, %v750_v0  ;;  %v809_v17 = vmul.f32 %v2799_v15, %v750_v0 }
 0x2e5   : > { %v747_v7 = vpop.permute.xlu0 %746 }
 0x2e6   : > { %v751_v9 = vadd.f32 %v747_v7, %v731_v1  ;;  %1939 = vmatprep.mubr.msk.f32.mxu0 %vm610_vm1, %v803_v4  ;;  %1942 = vmatprep.mubr.msk.f32.mxu1 %vm610_vm1, %v805_v5 }
 0x2e8   : > { %v804_v11 = vmul.f32 %v2772_v6, %v751_v9  ;;  %v806_v12 = vmul.f32 %v2777_v8, %v751_v9  ;;  %v808_v16 = vmul.f32 %v2792_v14, %v751_v9  ;;  %v810_v19 = vmul.f32 %v2807_v18, %v751_v9 }
 0x2ea   : > { %1940 = vmatmul.mubr.msk.f32.vlgmr.msra.gmra.mrb[4].mxu0 %vm610_vm1, %v804_v11  ;;  %1943 = vmatmul.mubr.msk.f32.vlgmr.msra.gmra.mrb[0].mxu1 %vm610_vm1, %v806_v12 }
 0x2eb   : > { %1945 = vmatprep.mubr.msk.f32.mxu1 %vm610_vm1, %v807_v13 }
 0x2ee   : > { %1946 = vmatmul.mubr.msk.f32.gmra.mrb[2].mxu1 %vm610_vm1, %v808_v16 }
 0x2ef   : > { %1948 = vmatprep.mubr.msk.f32.mxu1 %vm610_vm1, %v809_v17 }
 0x2f2   : > { %1949 = vmatmul.mubr.msk.f32.gmra.mrb[4].mxu1 %vm610_vm1, %v810_v19 }
 0x3bd   : > { %v1941_v20 = vpop.f32.mrb[4].mxu0  ;;  %v1944_v21 = vpop.f32.mrb[0].mxu1 }
 0x3be   : > { %v945_v24 = vmul.f32 0.35355338, %v1941_v20  ;;  %v905_v25 = vpop.f32.mrb[5].mxu0  ;;  %v915_v26 = vpop.f32.mrb[1].mxu1  ;;  %v947_v28 = vmul.f32 0.35355338, %v1944_v21 }
 0x3bf   : > { %v944_v29 = vmul.f32 0.35355338, %v905_v25  ;;  %v946_v30 = vmul.f32 0.35355338, %v915_v26 }
 0x3c0   : > { %v961_v31 = vadd.f32 %v953_v22, %v945_v24  ;;  %v963_v44 = vadd.f32 %v955_v32, %v947_v28 }
 0x3c1   : > { %v1947_v33 = vpop.f32.mrb[2].mxu1  ;;  %v960_v34 = vadd.f32 %v952_v23, %v944_v29  ;;  %v962_v38 = vadd.f32 %v954_v27, %v946_v30 }
 0x3c2   : > { %v925_v35 = vpop.f32.mrb[3].mxu1  ;;  %v972_v36 = vsel %vm968_vm3, %v961_v31, -inf  ;;  %v949_v39 = vmul.f32 0.35355338, %v1947_v33  ;;  %v978_v53 = vsel %vm968_vm3, %v963_v44, -inf }
 0x3c3   : > { %v948_v40 = vmul.f32 0.35355338, %v925_v35  ;;  %973 = vmax.xlane.f32.xlu0 %v972_v36  ;;  %v969_v42 = vsel %vm968_vm3, %v960_v34, -inf  ;;  %v975_v49 = vsel %vm968_vm3, %v962_v38, -inf }
 0x3c4   : > { %970 = vmax.xlane.f32.xlu1 %v969_v42  ;;  %v965_v54 = vadd.f32 %v957_v46, %v949_v39 }
 0x3c5   : > { %v1950_v47 = vpop.f32.mrb[4].mxu1  ;;  %v964_v50 = vadd.f32 %v956_v45, %v948_v40 }
 0x3c6   : > { %v935_v48 = vpop.f32.mrb[5].mxu1  ;;  %v951_v51 = vmul.f32 0.35355338, %v1950_v47  ;;  %v984_v61 = vsel %vm968_vm3, %v965_v54, -inf }
 0x3c7   : > { %v950_v52 = vmul.f32 0.35355338, %v935_v48  ;;  %976 = vmax.xlane.f32.xlu0 %v975_v49  ;;  %v981_v59 = vsel %vm968_vm3, %v964_v50, -inf }
 0x3c8   : > { %979 = vmax.xlane.f32.xlu1 %v978_v53  ;;  %v967_v0 = vadd.f32 %v959_v56, %v951_v51 }
 0x3c9   : > { %v966_v60 = vadd.f32 %v958_v55, %v950_v52 }
 0x3ca   : > { %v990_v4 = vsel %vm968_vm3, %v967_v0, -inf }
 0x3cb   : > { %982 = vmax.xlane.f32.xlu0 %v981_v59  ;;  %v987_v1 = vsel %vm968_vm3, %v966_v60, -inf }
 0x3cc   : > { %985 = vmax.xlane.f32.xlu1 %v984_v61 }
 0x3cf   : > { %988 = vmax.xlane.f32.xlu0 %v987_v1 }
 0x3d0   : > { %991 = vmax.xlane.f32.xlu1 %v990_v4 }
 0x450   : > { %v974_v5 = vpop.xlane.xlu0 %973 }
 0x451   : > { %v994_v7 = vsub.f32 %v961_v31, %v974_v5  ;;  %v971_v9 = vpop.xlane.xlu1 %970 }
 0x452   : > { %v993_v11 = vsub.f32 %v960_v34, %v971_v9 }
 0x453   : > { %v1003_v12 = vmul.f32 1.442695, %v994_v7 }
 0x454   : > { %v1001_v13 = vmul.f32 1.442695, %v993_v11  ;;  %v977_v16 = vpop.xlane.xlu0 %976 }
 0x455   : > { %2173 = vpow2.f32 %v1003_v12  ;;  %v995_v17 = vsub.f32 %v962_v38, %v977_v16  ;;  %v980_v19 = vpop.xlane.xlu1 %979 }
 0x456   : > { %2175 = vpow2.f32 %v1001_v13  ;;  %v996_v20 = vsub.f32 %v963_v44, %v980_v19 }
 0x457   : > { %v1005_v21 = vmul.f32 1.442695, %v995_v17 }
 0x458   : > { %v1007_v22 = vmul.f32 1.442695, %v996_v20  ;;  %v983_v23 = vpop.xlane.xlu0 %982 }
 0x459   : > { %2177 = vpow2.f32 %v1005_v21  ;;  %v997_v24 = vsub.f32 %v964_v50, %v983_v23  ;;  %v986_v25 = vpop.xlane.xlu1 %985 }
 0x45a   : > { %2179 = vpow2.f32 %v1007_v22  ;;  %v998_v26 = vsub.f32 %v965_v54, %v986_v25 }
 0x45b   : > { %v1009_v27 = vmul.f32 1.442695, %v997_v24 }
 0x45c   : > { %v1011_v28 = vmul.f32 1.442695, %v998_v26  ;;  %v989_v29 = vpop.xlane.xlu0 %988 }
 0x45d   : > { %2181 = vpow2.f32 %v1009_v27  ;;  %v999_v30 = vsub.f32 %v966_v60, %v989_v29  ;;  %v992_v31 = vpop.xlane.xlu1 %991  ;;  %v1206_v29 = vld [vmem:[%s2680_s11] sm:$0xff] }
 0x45e   : > { %2183 = vpow2.f32 %v1011_v28  ;;  %v1000_v32 = vsub.f32 %v967_v0, %v992_v31 }
 0x45f   : > { %v2174_v33 = vpop.eup %2173  ;;  %v1013_v34 = vmul.f32 1.442695, %v999_v30  ;;  %v1207_v30 = vld [vmem:[%s2680_s11 + $0x8] sm:$0xff] }
 0x460   : > { %v2176_v35 = vpop.eup %2175  ;;  %v1015_v36 = vmul.f32 1.442695, %v1000_v32  ;;  %v1020_v38 = vsel %vm968_vm3, %v2174_v33, 0.0  ;;  %v2037_v31 = vpack.c.bf16 %v1207_v30, %v1206_v29  ;;  %v1208_v32 = vld [vmem:[%s2680_s11 + $0x10] sm:$0xff]  ;;  %v1431_v30 = vld [vmem:[%s2690_s14 + $0x20] sm:$0xff] }
 0x461   : > { %2185 = vpow2.f32 %v1013_v34  ;;  %1021 = vadd.xlane.f32.xlu1 %v1020_v38  ;;  %v1017_v39 = vsel %vm968_vm3, %v2176_v35, 0.0 }
 0x462   : > { %2187 = vpow2.f32 %v1015_v36  ;;  %1018 = vadd.xlane.f32.xlu0 %v1017_v39  ;;  %2038 = vmatprep.subr.bf16.mxu1 %v2037_v31 }
 0x463   : > { %v2178_v40 = vpop.eup %2177  ;;  %2040 = vmatpush3.bf16.msra.mxu1 %v2037_v31  ;;  %v1432_v31 = vld [vmem:[%s2690_s14 + $0x28] sm:$0xff] }
 0x464   : > { %v2180_v42 = vpop.eup %2179  ;;  %v1023_v44 = vsel %vm968_vm3, %v2178_v40, 0.0 }
 0x465   : > { %v1026_v45 = vsel %vm968_vm3, %v2180_v42, 0.0 }
 0x466   : > { %1024 = vadd.xlane.f32.xlu0 %v1023_v44  ;;  %1027 = vadd.xlane.f32.xlu1 %v1026_v45 }
 0x467   : > { %v2182_v46 = vpop.eup %2181 }
 0x468   : > { %v2184_v47 = vpop.eup %2183  ;;  %v1029_v48 = vsel %vm968_vm3, %v2182_v46, 0.0 }
 0x469   : > { %v1032_v49 = vsel %vm968_vm3, %v2184_v47, 0.0 }
 0x46a   : > { %1030 = vadd.xlane.f32.xlu0 %v1029_v48  ;;  %1033 = vadd.xlane.f32.xlu1 %v1032_v49 }
 0x46b   : > { %v2186_v50 = vpop.eup %2185 }
 0x46c   : > { %v2188_v51 = vpop.eup %2187  ;;  %v1035_v52 = vsel %vm968_vm3, %v2186_v50, 0.0 }
 0x46d   : > { %v1038_v53 = vsel %vm968_vm3, %v2188_v51, 0.0 }
 0x46e   : > { %1036 = vadd.xlane.f32.xlu0 %v1035_v52  ;;  %1039 = vadd.xlane.f32.xlu1 %v1038_v53 }
 0x484   : > { %2165 = vrot.lane.b32.xlu0 %v2164_v43, %s2415_s26 }
 0x4ee   : > { %v1022_v55 = vpop.xlane.xlu1 %1021 }
 0x4ef   : > { %v1019_v54 = vpop.xlane.xlu0 %1018 }
 0x4f0   : > { %2189 = vrcp.f32 %v1019_v54 }
 0x4f1   : > { %2191 = vrcp.f32 %v1022_v55 }
 0x4f3   : > { %v1025_v56 = vpop.xlane.xlu0 %1024  ;;  %v1028_v59 = vpop.xlane.xlu1 %1027 }
 0x4f4   : > { %2193 = vrcp.f32 %v1025_v56 }
 0x4f5   : > { %2195 = vrcp.f32 %v1028_v59 }
 0x4f7   : > { %v1031_v60 = vpop.xlane.xlu0 %1030  ;;  %v1034_v4 = vpop.xlane.xlu1 %1033 }
 0x4f8   : > { %2197 = vrcp.f32 %v1031_v60 }
 0x4f9   : > { %2199 = vrcp.f32 %v1034_v4  ;;  %v1320_v4 = vld [vmem:[%s2685_s16 + $0x10] sm:$0xff] }
 0x4fa   : > { %v2190_v61 = vpop.eup %2189 }
 0x4fb   : > { %v1037_v0 = vpop.xlane.xlu0 %1036  ;;  %v1042_v1 = vmul.f32 %v2190_v61, %v2176_v35  ;;  %v1040_v43 = vpop.xlane.xlu1 %1039 }
 0x4fc   : > { %2201 = vrcp.f32 %v1037_v0  ;;  %v2192_v12 = vpop.eup %2191  ;;  %v1318_v0 = vld [vmem:[%s2685_s16] sm:$0xff] }
 0x4fd   : > { %1955 = vmatprep.mubr.msk.f32.mxu0 %vm968_vm3, %v1042_v1  ;;  %2203 = vrcp.f32 %v1040_v43  ;;  %v1044_v16 = vmul.f32 %v2192_v12, %v2174_v33  ;;  %v1209_v33 = vld [vmem:[%s2680_s11 + $0x18] sm:$0xff]  ;;  %v1319_v1 = vld [vmem:[%s2685_s16 + $0x8] sm:$0xff] }
 0x4fe   : > { %v2194_v13 = vpop.eup %2193  ;;  %v2041_v34 = vpack.c.bf16 %v1209_v33, %v1208_v32  ;;  %v2061_v32 = vpack.c.bf16 %v1432_v31, %v1431_v30  ;;  %v1433_v33 = vld [vmem:[%s2690_s14 + $0x30] sm:$0xff] }
 0x4ff   : > { %v2166_v5 = vpop.permute.xlu0 %2165  ;;  %v2196_v17 = vpop.eup %2195  ;;  %v1046_v19 = vmul.f32 %v2194_v13, %v2178_v40 }
 0x500   : > { %v2168_v7 = vunpack.i.h.bf16 %v2166_v5  ;;  %v2167_v9 = vunpack.i.l.bf16 %v2166_v5  ;;  %v1048_v21 = vmul.f32 %v2196_v17, %v2180_v42  ;;  %2042 = vmatprep.subr.bf16.mxu1 %v2041_v34  ;;  %v1321_v5 = vld [vmem:[%s2685_s16 + $0x18] sm:$0xff]  ;;  %v1864_v17 = vld [vmem:[%s3074_s21] ss:$0 sm:$0xff] }
 0x501   : > { %2044 = vmatpush3.bf16.msra.mxu1 %v2041_v34  ;;  %v1434_v34 = vld [vmem:[%s2690_s14 + $0x38] sm:$0xff] }
 0x502   : > { %v2033_v11 = vpack.c.bf16 %v2168_v7, %v2167_v9  ;;  %v2198_v20 = vpop.eup %2197 }
 0x503   : > { %v2200_v22 = vpop.eup %2199  ;;  %v1050_v23 = vmul.f32 %v2198_v20, %v2182_v46 }
 0x504   : > { %2034 = vmatprep.subr.bf16.mxu0 %v2033_v11  ;;  %v1052_v25 = vmul.f32 %v2200_v22, %v2184_v47 }
 0x505   : > { %2036 = vmatpush3.bf16.msra.mxu0 %v2033_v11 }
 0x506   : > { %v2202_v24 = vpop.eup %2201 }
 0x507   : > { %v2204_v26 = vpop.eup %2203  ;;  %v1054_v27 = vmul.f32 %v2202_v24, %v2186_v50  ;;  %v1427_v24 = vld [vmem:[%s2690_s14] sm:$0xff] }
 0x508   : > { %1956 = vmatmul.mubr.msk.f32.vlgmr.msra.gmra.mrb[6].mxu0 %vm968_vm3, %v1044_v16  ;;  %v1056_v28 = vmul.f32 %v2204_v26, %v2188_v51  ;;  %v1429_v26 = vld [vmem:[%s2690_s14 + $0x10] sm:$0xff] }
 0x509   : > { %1958 = vmatprep.mubr.msk.f32.mxu0 %vm968_vm3, %v1046_v19 }
 0x50c   : > { %1959 = vmatmul.mubr.msk.f32.gmra.mrb[8].mxu0 %vm968_vm3, %v1048_v21 }
 0x50d   : > { %1961 = vmatprep.mubr.msk.f32.mxu0 %vm968_vm3, %v1050_v23 }
 0x510   : > { %1962 = vmatmul.mubr.msk.f32.gmra.mrb[10].mxu0 %vm968_vm3, %v1052_v25  ;;  %v1428_v25 = vld [vmem:[%s2690_s14 + $0x8] sm:$0xff] }
 0x511   : > { %1964 = vmatprep.mubr.msk.f32.mxu0 %vm968_vm3, %v1054_v27  ;;  %v2053_v27 = vpack.c.bf16 %v1428_v25, %v1427_v24 }
 0x513   : > { %2054 = vmatprep.subr.bf16.mxu1 %v2053_v27 }
 0x514   : > { %1965 = vmatmul.mubr.msk.f32.gmra.mrb[12].mxu0 %vm968_vm3, %v1056_v28  ;;  %v1430_v28 = vld [vmem:[%s2690_s14 + $0x18] sm:$0xff] }
 0x515   : > { %v2057_v29 = vpack.c.bf16 %v1430_v28, %v1429_v26 }
 0x5db   : > { %v1957_v35 = vpop.f32.mrb[6].mxu0 }
 0x5dc   : > { %v1153_v36 = vpop.f32.mrb[7].mxu0  ;;  %v1193_v39 = vmul.f32 %v1957_v35, %v2772_v6  ;;  %v2065_v35 = vpack.c.bf16 %v1434_v34, %v1433_v33 }
 0x5dd   : > { %v1192_v44 = vmul.f32 %v1153_v36, %v2758_v62 }
 0x5df   : > { %v1960_v38 = vpop.f32.mrb[8].mxu0 }
 0x5e0   : > { %v1195_v40 = vmul.f32 %v1960_v38, %v2777_v8  ;;  %v1163_v42 = vpop.f32.mrb[9].mxu0 }
 0x5e1   : > { %v1194_v45 = vmul.f32 %v1163_v42, %v2763_v63 }
 0x5e2   : > { %v1201_v46 = vadd.f32 %v1195_v40, %v1193_v39 }
 0x5e3   : > { %v1200_v47 = vadd.f32 %v1194_v45, %v1192_v44  ;;  %v1963_v48 = vpop.f32.mrb[10].mxu0 }
 0x5e4   : > { %v1197_v49 = vmul.f32 %v1963_v48, %v2792_v14  ;;  %v1173_v50 = vpop.f32.mrb[11].mxu0 }
 0x5e5   : > { %v1196_v51 = vmul.f32 %v1173_v50, %v2784_v10 }
 0x5e6   : > { %v1203_v52 = vadd.f32 %v1201_v46, %v1197_v49 }
 0x5e7   : > { %v1202_v53 = vadd.f32 %v1200_v47, %v1196_v51  ;;  %v1966_v54 = vpop.f32.mrb[12].mxu0 }
 0x5e8   : > { %v1199_v6 = vmul.f32 %v1966_v54, %v2807_v18  ;;  %v1183_v55 = vpop.f32.mrb[13].mxu0 }
 0x5e9   : > { %v1198_v8 = vmul.f32 %v1183_v55, %v2799_v15 }
 0x5ea   : > { %v1205_v62 = vadd.f32 %v1203_v52, %v1199_v6 }
 0x5eb   : > { %v1204_v63 = vadd.f32 %v1202_v53, %v1198_v8 }
 0x5ed   : > { %1975 = vmatprep.mubr.msk.f32.mxu1 %vm610_vm1, %v1204_v63 }
 0x5ee   : > { %1976 = vmatmul.mubr.msk.f32.vlgmr.msra.gmra.mrb[6].mxu1 %vm610_vm1, %v1205_v62 }
 0x5ef   : > { %2056 = vmatpush3.bf16.msra.mxu1 %v2053_v27 }
 0x5f0   : > { %2058 = vmatprep.subr.bf16.mxu1 %v2057_v29 }
 0x5f3   : > { %2060 = vmatpush3.bf16.msra.mxu1 %v2057_v29 }
 0x5f4   : > { %2062 = vmatprep.subr.bf16.mxu1 %v2061_v32 }
 0x5f7   : > { %2064 = vmatpush3.bf16.msra.mxu1 %v2061_v32 }
 0x5f8   : > { %2066 = vmatprep.subr.bf16.mxu1 %v2065_v35 }
 0x5fb   : > { %2068 = vmatpush3.bf16.msra.mxu1 %v2065_v35 }
 0x6c1   : > { %v1977_v14 = vpop.f32.mrb[6].mxu1 }
 0x6c2   : > { %v1282_v10 = vpop.f32.mrb[7].mxu1  ;;  %v2880_v56 = vadd.f32 %v1977_v14, %v2698_v3  ;;  %v2045_v3 = vpack.c.bf16 %v1319_v1, %v1318_v0 }
 0x6c3   : > { %v2883_v18 = vadd.f32 %v1282_v10, %v2696_v2  ;;  %v2049_v2 = vpack.c.bf16 %v1321_v5, %v1320_v4 }
 0x6c4   : > { %v1294_v60 = vmul.f32 %v2880_v56, %v2880_v56  ;;  %2046 = vmatprep.subr.bf16.mxu0 %v2045_v3 }
 0x6c5   : > { %v1293_v15 = vmul.f32 %v2883_v18, %v2883_v18  ;;  %2048 = vmatpush3.bf16.msra.mxu0 %v2045_v3 }
 0x6c6   : > { %v1298_v61 = vsel %vm610_vm1, %v1294_v60, 0.0  ;;  %2050 = vmatprep.subr.bf16.mxu0 %v2049_v2  ;;  %v1551_v60 = vld [vmem:[%s3034_s12 + $0x10] sm:$0xff] (!%p1871_p7) }
 0x6c7   : > { %v1295_v59 = vsel %vm610_vm1, %v1293_v15, 0.0 }
 0x6c8   : > { %1296 = vadd.xlane.f32.xlu1 %v1295_v59 }
 0x6c9   : > { %2052 = vmatpush3.bf16.msra.mxu0 %v2049_v2 }
 0x6cc   : > { %1299 = vadd.xlane.f32.xlu1 %v1298_v61  ;;  %v1552_v61 = vld [vmem:[%s3034_s12 + $0x18] sm:$0xff] (!%p1871_p7) }
 0x6cd   : > { %v2073_v0 = vpack.c.bf16 (!%p1871_p7), %v1552_v61, %v1551_v60 }
 0x755   : > { %v1297_v7 = vpop.xlane.xlu1 %1296 }
 0x756   : > { %v1301_v9 = vmul.f32 0.03125, %v1297_v7 }
 0x758   : > { %v1303_v43 = vadd.f32 1e-06, %v1301_v9 }
 0x759   : > { %v1300_v11 = vpop.xlane.xlu1 %1299 }
 0x75a   : > { %2205 = vrsqrt.f32 %v1303_v43  ;;  %v1302_v12 = vmul.f32 0.03125, %v1300_v11  ;;  %v1872_v43 = vld [vmem:[%s3075_s19] ss:$0 sm:$0xff] (!%p1871_p7) }
 0x75c   : > { %v1304_v13 = vadd.f32 1e-06, %v1302_v12 }
 0x75e   : > { %2207 = vrsqrt.f32 %v1304_v13 }
 0x764   : > { %v2206_v16 = vpop.eup %2205 }
 0x765   : > { %v1307_v19 = vmul.f32 %v2206_v16, %v2883_v18 }
 0x767   : > { %v1316_v20 = vmul.f32 %v1864_v17, %v1307_v19 }
 0x768   : > { %v2208_v21 = vpop.eup %2207 }
 0x769   : > { %v1308_v22 = vmul.f32 %v2208_v21, %v2880_v56  ;;  %1986 = vmatprep.mubr.msk.f32.mxu0 %vm610_vm1, %v1316_v20 }
 0x76b   : > { %v1317_v23 = vmul.f32 %v1864_v17, %v1308_v22 }
 0x76d   : > { %1987 = vmatmul.mubr.msk.f32.vlgmr.msra.gmra.mrb[14].mxu0 %vm610_vm1, %v1317_v23 }
 0x840   : > { %v1988_v36 = vpop.f32.mrb[14].mxu0 }
 0x841   : > { %1421 = vrot.lane.b32.xlu0 %v1988_v36, %s2415_s26  ;;  %v1394_v38 = vpop.f32.mrb[15].mxu0  ;;  %v1868_v40 = vmul.f32 -1.442695, %v1988_v36 }
 0x842   : > { %1419 = vrot.lane.b32.xlu1 %v1394_v38, %s2415_s26  ;;  %v1867_v39 = vmul.f32 -1.442695, %v1394_v38 }
 0x844   : > { %2209 = vpow2.f32 %v1867_v39 }
 0x845   : > { %784 = vrot.lane.b32.xlu0 %v2728_v37, %s2414_s18  ;;  %2211 = vpow2.f32 %v1868_v40 }
 0x846   : > { %786 = vrot.lane.b32.xlu1 %v2731_v41, %s2414_s18 }
 0x84e   : > { %v2210_v42 = vpop.eup %2209 }
 0x84f   : > { %v2212_v44 = vpop.eup %2211  ;;  %v1409_v45 = vadd.f32 1.0, %v2210_v42 }
 0x850   : > { %v1410_v46 = vadd.f32 1.0, %v2212_v44 }
 0x851   : > { %2213 = vrcp.f32 %v1409_v45 }
 0x852   : > { %2215 = vrcp.f32 %v1410_v46 }
 0x85b   : > { %v2214_v47 = vpop.eup %2213 }
 0x85c   : > { %v2216_v48 = vpop.eup %2215  ;;  %v1415_v49 = vmul.f32 %v2214_v47, %v1394_v38 }
 0x85d   : > { %v1416_v37 = vmul.f32 %v2216_v48, %v1988_v36 }
 0x8b3   : > { %v1422_v50 = vpop.permute.xlu0 %1421 }
 0x8b4   : > { %v1420_v51 = vpop.permute.xlu1 %1419  ;;  %v1426_v52 = vmul.f32 %v1422_v50, %v1416_v37 }
 0x8b5   : > { %v1425_v41 = vmul.f32 %v1420_v51, %v1415_v49 }
 0x8b7   : > { %v785_v53 = vpop.permute.xlu0 %784  ;;  %2005 = vmatprep.mubr.msk.f32.mxu1 %vm792_vm4, %v1425_v41 }
 0x8b8   : > { %v790_v54 = vsel %vm610_vm1, %v2746_v57, %v785_v53  ;;  %v787_v6 = vpop.permute.xlu1 %786  ;;  %2006 = vmatmul.mubr.msk.f32.vlgmr.msra.gmra.mrb[8].mxu1 %vm792_vm4, %v1426_v52 }
 0x8b9   : > { %793 = vst.msk [vmem:[%s2692_s23] sm:$0xff] %vm792_vm4, %v790_v54  ;;  %v791_v55 = vsel %vm610_vm1, %v2748_v58, %v787_v6 }
 0x8ba   : > { %794 = vst.msk [vmem:[%s2692_s23 + $0x8] sm:$0xff] %vm792_vm4, %v791_v55 }
 0x989   : > { %1523 = sbr.rel (%p1871_p7) target bundleno = 2829 (0xb0d), region = 92 }
 0x98b   : > { %v2007_v8 = vpop.f32.mrb[8].mxu1 }
 0x98c   : > { %v1517_v62 = vadd.f32 %v2007_v8, %v2880_v56  ;;  %v1507_v63 = vpop.f32.mrb[9].mxu1  ;;  %v1549_v56 = vld [vmem:[%s3034_s12] sm:$0xff] (!%p1871_p7) }
 0x98d   : > { %v1516_v14 = vadd.f32 %v1507_v63, %v2883_v18  ;;  %v1550_v18 = vld [vmem:[%s3034_s12 + $0x8] sm:$0xff] (!%p1871_p7) }
 0x98e   : > { %1519 = vst.msk [vmem:[#allocation2 + $0x8] sm:$0xff] %vm610_vm1, %v1517_v62  ;;  %v1525_v10 = vmul.f32 (!%p1871_p7), %v1517_v62, %v1517_v62  ;;  %v2069_v59 = vpack.c.bf16 (!%p1871_p7), %v1550_v18, %v1549_v56 }
 0x98f   : > { %1518 = vst.msk [vmem:[#allocation2] sm:$0xff] %vm610_vm1, %v1516_v14  ;;  %v1524_v57 = vmul.f32 (!%p1871_p7), %v1516_v14, %v1516_v14 }
 0x990   : > { %v1529_v58 = vsel %vm610_vm1, %v1525_v10, 0.0  ;;  %2070 = vmatprep.subr.bf16.mxu0 %v2069_v59 }
 0x991   : > { %v1526_v15 = vsel %vm610_vm1, %v1524_v57, 0.0  ;;  %2072 = vmatpush3.bf16.msra.mxu0 %v2069_v59 }
 0x992   : > { %1527 = vadd.xlane.f32.xlu0 %v1526_v15  ;;  %2074 = vmatprep.subr.bf16.mxu0 %v2073_v0 }
 0x995   : > { %2076 = vmatpush3.bf16.msra.mxu0 %v2073_v0 }
 0x996   : > { %1530 = vadd.xlane.f32.xlu0 %v1529_v58 }
 0xa1f   : > { %v1528_v1 = vpop.xlane.xlu0 %1527 }
 0xa20   : > { %v1532_v4 = vmul.f32 0.03125, %v1528_v1 }
 0xa22   : > { %v1534_v3 = vadd.f32 1e-06, %v1532_v4 }
 0xa23   : > { %v1531_v5 = vpop.xlane.xlu0 %1530 }
 0xa24   : > { %2217 = vrsqrt.f32 %v1534_v3  ;;  %v1533_v2 = vmul.f32 0.03125, %v1531_v5 }
 0xa26   : > { %v1535_v7 = vadd.f32 1e-06, %v1533_v2 }
 0xa28   : > { %2219 = vrsqrt.f32 %v1535_v7 }
 0xa2e   : > { %v2218_v9 = vpop.eup %2217 }
 0xa2f   : > { %v1538_v11 = vmul.f32 %v2218_v9, %v1516_v14 }
 0xa31   : > { %v1547_v12 = vmul.f32 %v1872_v43, %v1538_v11 }
 0xa32   : > { %v2220_v13 = vpop.eup %2219 }
 0xa33   : > { %v1539_v16 = vmul.f32 %v2220_v13, %v1517_v62  ;;  %2016 = vmatprep.mubr.msk.f32.mxu0 %vm610_vm1, %v1547_v12 }
 0xa35   : > { %v1548_v17 = vmul.f32 %v1872_v43, %v1539_v16 }
 0xa37   : > { %2017 = vmatmul.mubr.msk.f32.vlgmr.msra.gmra.mrb[0].mxu0 %vm610_vm1, %v1548_v17 }
 0xb0a   : > { %v2018_v19 = vpop.f32.mrb[0].mxu0 }
 0xb0b   : > { %1635 = vst [vmem:[#allocation10 + $0x8] sm:$0xff] %v2018_v19  ;;  %v1625_v20 = vpop.f32.mrb[1].mxu0 }
 0xb0c   : > { %1634 = vst [vmem:[#allocation10] sm:$0xff] %v1625_v20 }
 0xb0d PF: > { %s3076_s24 = sld [smem:[#allocation21_spill]]  ;;  %s1886_s26 = sshll.u32 %s2516_s17, 8 }
 0xb0e   : > { %s3077_s21 = sld [smem:[#allocation24_spill]]  ;;  %s1650_s14 = sshll.u32 %s2692_s23, 4  ;;  %s2955_s14 = int_to_ptr.vmem [resolvable:$true] %s1650_s14 }
 0xb0f   : > { %s3078_s18 = sand.u32 1, %s2397_s30   ;;  %s2305_s27 = scalar_lea.vmem %s2955_s14, 256 }
 0xb10   : > { %s2959_s29 = scalar_lea.sflag [#allocation5], %s3078_s18  ;;  %p2306_p8 = scmp.ne.s32.totalorder %s2955_s14, %s2305_s27 }
 0xb11   : > { %s2416_s20 = smov [#allocation9]  }
 0xb12   : > { %s2309_s28 = sshll.u32 %s2416_s20, 4  ;;  %s2310_s28 = int_to_ptr.vmem [resolvable:$false] %s2309_s28 }
 0xb13   : > { %p3079_p12 = scmp.ne.s32.totalorder %s3076_s24, 0  ;;  %s2311_s15 = scalar_lea.vmem %s2310_s28, 512 }
 0xb14   : > { %s2952_s25 = scalar_lea.hbm %s3077_s21, %s1886_s26  ;;  %p2312_p2 = scmp.lt.s32.totalorder %s2955_s14, %s2310_s28 }
 0xb15   : > { %p2307_p0 = pnand %p2306_p8, %p3079_p12  ;;  %p2313_p6 = scmp.lt.s32.totalorder %s2311_s15, %s2305_s27 }
 0xb17   : > { %p2308_p3 = pneg %p2307_p0  ;;  %p2314_p9 = por %p2313_p6, %p2312_p2 }
 0xb19   : > { %p2315_p1 = pnand %p2314_p9, %p2308_p3 }
 0xb1b   : > { %2318 = shalt.err (!%p2315_p1)
}
 0xb1c   : > { %s2319_s23 = scalar_lea.hbm %s2952_s25, 256  ;;  %s2323_s19 = scalar_lea.hbm %s3077_s21, 512 }
 0xb1d   : > { %p2320_p10 = scmp.ne.s32.totalorder %s2952_s25, %s2319_s23  ;;  %p2324_p13 = scmp.lt.u32.totalorder %s2952_s25, %s3077_s21 }
 0xb1e   : > { %p2325_p4 = scmp.lt.u32.totalorder %s2323_s19, %s2319_s23  ;;  %p2327_p8 = scmp.lt.u32.totalorder %s2319_s23, %s2952_s25 }
 0xb1f   : > { %p2321_p5 = pnand %p2320_p10, %p3079_p12 }
 0xb20   : > { %p2326_p7 = por %p2325_p4, %p2324_p13 }
 0xb21   : > { %p2322_p11 = pneg %p2321_p5 }
 0xb22   : > { %p2328_p0 = por %p2327_p8, %p2326_p7 }
 0xb24   : > { %p2329_p3 = pnand %p2328_p0, %p2322_p11 }
 0xb26   : > { %2332 = shalt.err (!%p2329_p3)
}
 0xb27   : > { %s2417_s11 = smov 128   ;;  %s2418_s18 = smov 8  }
 0xb28   : > { %2091 = dma.vmem_to_hbm [thread:$0]  (%p3079_p12), %s2955_s14, 256, %s2952_s25, %s2959_s29, %s2417_s11, %s2417_s11, %s2418_s18  }
 0xb29   : > { %s2419_s27 = smov [#allocation10]   ;;  %p3080_p6 = scmp.eq.s32.totalorder %s2516_s17, 1 }
 0xb2a   : > { %s1663_s20 = sshll.u32 %s2419_s27, 4  ;;  %s1664_s20 = int_to_ptr.vmem [resolvable:$true] %s1663_s20 }
 0xb2b   : > { %s2333_s28 = scalar_lea.vmem %s1664_s20, 256  ;;  %p2340_p10 = scmp.lt.s32.totalorder %s1664_s20, %s1664_s20 }
 0xb2c   : > { %p2334_p2 = scmp.ne.s32.totalorder %s1664_s20, %s2333_s28  ;;  %p2341_p5 = scmp.lt.s32.totalorder %s2333_s28, %s2333_s28 }
 0xb2e   : > { %p2335_p9 = pnand %p2334_p2, %p3080_p6  ;;  %p2342_p11 = por %p2341_p5, %p2340_p10 }
 0xb30   : > { %p2336_p1 = pneg %p2335_p9 }
 0xb32   : > { %p2343_p13 = pnand %p2342_p11, %p2336_p1 }
 0xb34   : > { %2346 = shalt.err (!%p2343_p13)
}
 0xb35   : > { %s3081_s13 = sld [smem:[#allocation25_spill]]  ;;  %p3082_p4 = pmov %p3080_p6 }
 0xb3b   : > { %s2347_s22 = scalar_lea.hbm %s3081_s13, 256 }
 0xb3c   : > { %p2348_p12 = scmp.ne.s32.totalorder %s3081_s13, %s2347_s22  ;;  %p2353_p0 = scmp.lt.u32.totalorder %s2347_s22, %s3081_s13 }
 0xb3e   : > { %p2349_p7 = pnand %p2348_p12, %p3082_p4 }
 0xb40   : > { %p2350_p8 = pneg %p2349_p7 }
 0xb42   : > { %p2355_p3 = pnand %p2353_p0, %p2350_p8 }
 0xb44   : > { %2358 = shalt.err (!%p2355_p3)
}
 0xb45   : > { %p3083_p2 = pmov %p3082_p4 }
 0xb47   : > { %2093 = dma.vmem_to_hbm [thread:$0]  (%p3083_p2), %s1664_s20, 256, %s3081_s13, [#allocation11], %s2417_s11, %s2417_s11, %s2418_s18  }
 0xb48   : > { %p3084_p6 = pmov %p3083_p2 }
 0xb49   : > { %p3085_p9 = pmov %p3083_p2 }
 0xb4a   : > { %2384 = dma.done.wait (%p3084_p6), [#allocation11], 256  }
 0xb4b   : > { %2386 = vsyncadd (%p3085_p9), [#allocation11], 4294967040 }
 0xb4c PF: > { %s3086_s16 = sld [smem:[#allocation18_spill]]  ;;  %s3087_s27 = sld [smem:[#allocation16_spill]] }
 0xb4d   : > { %s3088_s28 = sld [smem:[#allocation22_spill]] }
 0xb52   : > { %p2119_p1 = scmp.ge.s32.totalorder %s3086_s16, 2  ;;  %s1682_s15 = sand.u32 1, %s3087_s27  }
 0xb53   : > { %p3089_p10 = scmp.ne.s32.totalorder %s3088_s28, 0  ;;  %s1683_s23 = scalar_lea.sflag [#allocation5], %s1682_s15 }
 0xb55   : > { %p2108_p5 = pnand %p2119_p1, %p3089_p10 }
 0xb57   : > { %2388 = dma.done.wait (!%p2108_p5), %s1683_s23, 256  }
 0xb58   : > { %2390 = vsyncadd (!%p2108_p5), %s1683_s23, 4294967040  ;;  %s3090_s16 = sld [smem:[#allocation19_spill]]  ;;  %s3091_s22 = sld [smem:[#allocation17_spill]] }
 0xb59   : > { %s3092_s15 = sld [smem:[#allocation20_spill]]  ;;  %s3093_s29 = smov %s2397_s30 }
 0xb5e   : > { %p28_p11 = scmp.ge.s32.totalorder %s3090_s16, 4   ;;  %s3094_s30 = smov %s3091_s22 }
 0xb60   :  { %30 = sbr.rel (!%p28_p11) target bundleno = 10 (0xa), region = 151 }
 0xb67   :  { %1688 = vsyncpa [#allocation4], 1 }
 0xb68   :  { %1690 = vsyncpa [#allocation4 + $0x1], 1 }
 0xb69   :  { %1691 = vsyncpa [#allocation7], 1 }
 0xb6a   :  { %1692 = vsyncpa [#allocation5], 1 }
 0xb6b   :  { %1694 = vsyncpa [#allocation5 + $0x1], 1 }
 0xb6c   :  { %1695 = vsyncpa [#allocation11], 1 }

</bundles_post_ra>
